<compile_context>
chip_gen: v5e
topology: v5e:2x2
jax: 0.10.0
libtpu: 0.0.40
codegen_flags: <defaults>
</compile_context>

<pallas_src>
import math
import functools

import numpy as np
import jax
import jax.numpy as jnp
from jax.experimental import pallas as pl
from jax.experimental.pallas import tpu as pltpu


# ----------------------------- Pallas kernel --------------------------------
def _gridmask_kernel(params_ref, x_ref, o_ref, *, mode):
    """params_ref (SMEM, int32[4]) = [d, l, row_shift, col_shift].

    row_shift = (off_h - st_h) mod d   (non-negative, computed host-side)
    col_shift = (off_w - st_w) mod d
    A pixel at image position (row, col) lies in a stripe iff
      ((row + row_shift) mod d < l) or ((col + col_shift) mod d < l).
    """
    d = params_ref[0]
    l = params_ref[1]
    row_shift = params_ref[2]
    col_shift = params_ref[3]

    _, th, w = x_ref.shape
    row0 = pl.program_id(0) * th          # tile origin in the full image

    # Separable predicate: dynamic-divisor integer rem on O(TH + W) elements
    # instead of O(TH*W).  Operands are guaranteed non-negative, so trunc-rem
    # equals the floor-mod the reference loops imply.
    rows = jax.lax.broadcasted_iota(jnp.int32, (th, 1), 0) + (row0 + row_shift)
    cols = jax.lax.broadcasted_iota(jnp.int32, (1, w), 1) + col_shift
    rr = jax.lax.rem(rows, d)
    cc = jax.lax.rem(cols, d)

    if mode == 1:
        # mode 1 inverts the mask: keep exactly the stripe-covered pixels.
        keep = jnp.logical_or(rr < l, cc < l)        # (th, w) via broadcast
    else:
        keep = jnp.logical_and(rr >= l, cc >= l)     # (th, w) via broadcast

    x = x_ref[...]
    zero = jnp.zeros((), dtype=x.dtype)
    o_ref[...] = jnp.where(keep[None, :, :], x, zero)   # single VPU select


# ----------------------------- python glue ----------------------------------
def _sample_grid_params(rng, h, w, d1, d2, rotate, ratio, prob):
    """Mirrors the np.random call sequence of Grid.__call__."""
    apply_mask = rng.rand() <= prob
    hh = math.ceil(math.sqrt(h * h + w * w))
    d = int(rng.randint(d1, d2))
    _ = rng.rand()                      # rand_ratio (sampled but unused: l uses self.ratio)
    l = int(math.ceil(d * ratio))
    st_h = int(rng.randint(d))
    st_w = int(rng.randint(d))
    r = int(rng.randint(rotate))        # rotate=1 -> r == 0 (identity)
    return apply_mask, hh, d, l, st_h, st_w, r


def _choose_row_tile(c, h, w, itemsize, vmem_budget_bytes=32 * 1024 * 1024):
    """Largest H tile whose double-buffered in+out footprint fits a 32 MiB
    VMEM budget (within the scoped default on v5e/v6e/v7x)."""
    w_pad = -(-w // 128) * 128                       # lane padding
    bytes_per_row = max(1, c * w_pad * itemsize)
    # input + output, each double-buffered -> 4 live tiles.
    max_rows = max(8, vmem_budget_bytes // (4 * bytes_per_row))
    if max_rows >= h:
        return h                                     # single full block
    return max(8, (max_rows // 8) * 8)               # keep sublane alignment


def gridmask_forward(x, *, d1, d2, rotate=1, ratio=0.5, mode=0, prob=1.0,
                     seed=0, row_tile=None):
    """GridMask.forward for a single CHW image `x`."""
    c, h, w = x.shape
    rng = np.random.RandomState(seed)
    apply_mask, hh, d, l, st_h, st_w, r = _sample_grid_params(
        rng, h, w, d1, d2, rotate, ratio, prob)

    if not apply_mask:
        return x
    # TODO(synk): rotation r > 0 (PIL Image.rotate) not supported; rotate=1 -> r == 0.
    assert r == 0, "rotation not supported (use rotate=1)"

    off_h = (hh - h) // 2
    off_w = (hh - w) // 2
    # Fold crop offset and stripe phase into non-negative shifts host-side so
    # the in-kernel rem() only ever sees non-negative operands.
    row_shift = (off_h - st_h) % d
    col_shift = (off_w - st_w) % d
    params = jnp.array([d, l, row_shift, col_shift], dtype=jnp.int32)

    th = row_tile if row_tile is not None else _choose_row_tile(
        c, h, w, jnp.dtype(x.dtype).itemsize)
    th = max(1, min(th, h))
    num_tiles = pl.cdiv(h, th)

    kernel = functools.partial(_gridmask_kernel, mode=mode)
    out = pl.pallas_call(
        kernel,
        out_shape=jax.ShapeDtypeStruct((c, h, w), x.dtype),
        grid=(num_tiles,),
        in_specs=[
            pl.BlockSpec(memory_space=pltpu.MemorySpace.SMEM),   # params
            pl.BlockSpec((c, th, w), lambda i: (0, i, 0)),       # image tile
        ],
        out_specs=pl.BlockSpec((c, th, w), lambda i: (0, i, 0)),
        input_output_aliases={1: 0},      # elementwise: write back into x's buffer
        compiler_params=pltpu.CompilerParams(
            dimension_semantics=("parallel",)),
    )(params, x)
    # forward(): y = torch.cat([grid(x)]).view(c, h, w) == grid(x)
    return out


# ------------------------ numpy reference (loop-based) ----------------------
def _reference(x_np, *, d1, d2, rotate, ratio, mode, prob, seed):
    c, h, w = x_np.shape
    rng = np.random.RandomState(seed)
    apply_mask, hh, d, l, st_h, st_w, r = _sample_grid_params(
        rng, h, w, d1, d2, rotate, ratio, prob)
    if not apply_mask:
        return x_np
    mask = np.ones((hh, hh), np.float32)
    for i in range(-1, hh // d + 1):
        s = d * i + st_h
        t = s + l
        s = max(min(s, hh), 0)
        t = max(min(t, hh), 0)
        mask[s:t, :] *= 0
    for i in range(-1, hh // d + 1):
        s = d * i + st_w
        t = s + l
        s = max(min(s, hh), 0)
        t = max(min(t, hh), 0)
        mask[:, s:t] *= 0
    # r == 0 -> identity rotation
    mask = mask[(hh - h) // 2:(hh - h) // 2 + h,
                (hh - w) // 2:(hh - w) // 2 + w]
    if mode == 1:
        mask = 1.0 - mask
    return x_np * mask[None, :, :]


# ----------------------------------- main ------------------------------------
if __name__ == "__main__":
    # Small but lane-dense image: last dim = 128 keeps output stores unmasked.
    c, h, w = 3, 32, 128
    key = jax.random.PRNGKey(0)
    x = jax.random.normal(key, (c, h, w), dtype=jnp.float32)
    x_np = np.asarray(x)

    for mode in (0, 1):
        cfg = dict(d1=4, d2=16, rotate=1, ratio=0.5, mode=mode, prob=1.0, seed=0)
        y_ref = _reference(x_np, **cfg)

        # Default (auto) row tile — single full block at this small size.
        y_auto = jax.block_until_ready(gridmask_forward(x, **cfg))
        np.testing.assert_allclose(np.asarray(y_auto), y_ref, rtol=1e-6, atol=1e-6)

        # Forced small tile exercises the multi-tile pipelined path and the
        # per-tile row-offset logic.
        y_tiled = jax.block_until_ready(gridmask_forward(x, row_tile=8, **cfg))
        np.testing.assert_allclose(np.asarray(y_tiled), y_ref, rtol=1e-6, atol=1e-6)

    print("KERNEL_OK")
</pallas_src>

<mosaic_0001>
module attributes {stable_mosaic.version = 11 : i64} {
  func.func @_gridmask_kernel(%arg0: i32, %arg1: memref<4xi32, #tpu.memory_space<smem>>, %arg2: memref<3x32x128xf32, #tpu.memory_space<vmem>>, %arg3: memref<3x32x128xf32, #tpu.memory_space<vmem>>) attributes {dimension_semantics = [#tpu.dimension_semantics<parallel>], iteration_bounds = array<i64: 1>, scalar_prefetch = 0 : i64, scratch_operands = 0 : i64, tpu.core_type = #tpu.core_type<tc>, window_params = [{transform_indices = @transform_0, window_bounds = array<i64: 4>}, {transform_indices = @transform_1, window_bounds = array<i64: 3, 32, 128>}, {transform_indices = @transform_2, window_bounds = array<i64: 3, 32, 128>}]} {
    %c0 = arith.constant 0 : index
    %0 = memref.load %arg1[%c0] : memref<4xi32, #tpu.memory_space<smem>>
    %c1 = arith.constant 1 : index
    %1 = memref.load %arg1[%c1] : memref<4xi32, #tpu.memory_space<smem>>
    %c2 = arith.constant 2 : index
    %2 = memref.load %arg1[%c2] : memref<4xi32, #tpu.memory_space<smem>>
    %c3 = arith.constant 3 : index
    %3 = memref.load %arg1[%c3] : memref<4xi32, #tpu.memory_space<smem>>
    %c32_i32 = arith.constant 32 : i32
    %4 = arith.muli %arg0, %c32_i32 : i32
    %5 = tpu.iota {dimensions = array<i32: 0>} : vector<32x1xi32>
    %6 = arith.addi %4, %2 : i32
    %7 = vector.broadcast %6 : i32 to vector<32x1xi32>
    %8 = arith.addi %5, %7 : vector<32x1xi32>
    %9 = tpu.iota {dimensions = array<i32: 1>} : vector<1x128xi32>
    %10 = vector.broadcast %3 : i32 to vector<1x128xi32>
    %11 = arith.addi %9, %10 : vector<1x128xi32>
    %12 = vector.broadcast %0 : i32 to vector<32x1xi32>
    %13 = arith.remsi %8, %12 : vector<32x1xi32>
    %14 = vector.broadcast %0 : i32 to vector<1x128xi32>
    %15 = arith.remsi %11, %14 : vector<1x128xi32>
    %16 = vector.broadcast %1 : i32 to vector<32x1xi32>
    %17 = arith.cmpi sge, %13, %16 : vector<32x1xi32>
    %18 = vector.broadcast %1 : i32 to vector<1x128xi32>
    %19 = arith.cmpi sge, %15, %18 : vector<1x128xi32>
    %20 = vector.broadcast %17 : vector<32x1xi1> to vector<32x128xi1>
    %21 = vector.broadcast %19 : vector<1x128xi1> to vector<32x128xi1>
    %22 = arith.andi %20, %21 : vector<32x128xi1>
    %c0_0 = arith.constant 0 : index
    %c0_1 = arith.constant 0 : index
    %c0_2 = arith.constant 0 : index
    %23 = vector.load %arg2[%c0_0, %c0_1, %c0_2] : memref<3x32x128xf32, #tpu.memory_space<vmem>>, vector<3x32x128xf32>
    %24 = vector.shape_cast %22 : vector<32x128xi1> to vector<1x32x128xi1>
    %cst = arith.constant 0.000000e+00 : f32
    %25 = vector.shape_cast %24 : vector<1x32x128xi1> to vector<1x32x128xi1>
    %26 = vector.broadcast %25 : vector<1x32x128xi1> to vector<3x32x128xi1>
    %27 = vector.broadcast %cst : f32 to vector<3x32x128xf32>
    %28 = arith.select %26, %23, %27 : vector<3x32x128xi1>, vector<3x32x128xf32>
    %c0_3 = arith.constant 0 : index
    %c0_4 = arith.constant 0 : index
    %c0_5 = arith.constant 0 : index
    %29 = vector.load %arg3[%c0_3, %c0_4, %c0_5] : memref<3x32x128xf32, #tpu.memory_space<vmem>>, vector<3x32x128xf32>
    tpu.vector_store %arg3[%c0_3, %c0_4, %c0_5], %28 {strides = array<i32>} : memref<3x32x128xf32, #tpu.memory_space<vmem>>, vector<3x32x128xf32>,
    return
  }
  func.func @transform_0(%arg0: i32) -> i32 {
    %c0_i32 = arith.constant 0 : i32
    %c0_i32_0 = arith.constant 0 : i32
    return %c0_i32 : i32
  }
  func.func @transform_1(%arg0: i32) -> (i32, i32, i32) {
    %c0_i32 = arith.constant 0 : i32
    %c0_i32_0 = arith.constant 0 : i32
    %c0_i32_1 = arith.constant 0 : i32
    return %c0_i32, %arg0, %c0_i32_0 : i32, i32, i32
  }
  func.func @transform_2(%arg0: i32) -> (i32, i32, i32) {
    %c0_i32 = arith.constant 0 : i32
    %c0_i32_0 = arith.constant 0 : i32
    %c0_i32_1 = arith.constant 0 : i32
    return %c0_i32, %arg0, %c0_i32_0 : i32, i32, i32
  }
}

</mosaic_0001>

<bundles_post_ra>
// kernel: tpu_custom_call.1
= control target key start
LH: loop header
LB: loop body
LE: loop exit
PB: predicated region body
PF: predicated region fallthrough
CT: control target
= control target key end

     0   :  { %7 = vsyncpa [#allocation5], 0  ;;  %s3047_s0 = inlined_call_operand.vmem [shape: s32[4], index: 0, kind: input, shape index: {}]   ;;  %s3048_s1 = inlined_call_operand.hbm [shape: f32[3,32,128], index: 1, kind: input, shape index: {}, may-alias: {1,2}]   ;;  %s3049_s2 = inlined_call_operand.hbm [shape: f32[3,32,128], index: 2, kind: output, shape index: {}, may-alias: {1,2}]  }
   0x1   :  { %8 = vsyncpa [#allocation3], 0 }
   0x2   :  { %9 = vsyncpa [#allocation4], 0  ;;  %s15_s11 = sshll.u32 %s3047_s0, 4  ;;  %s23_s14 = sshll.u32 %s3048_s1, 4  ;;  %s16_s11 = int_to_ptr.vmem [resolvable:$true] %s15_s11  ;;  %s24_s14 = int_to_ptr.hbm [resolvable:$true] %s23_s14 }
   0x3   :  { %s2340_s15 = smov [#allocation2]   ;;  %s2341_s16 = smov [#allocation6]  }
   0x4   :  { %18 = dma.vmem_to_smem %s16_s11, 16, %s2340_s15, [#allocation5]  }
   0x5   :  { %s25_s17 = sshll.u32 %s2341_s16, 4  ;;  %s2342_s18 = smov 128   ;;  %s26_s17 = int_to_ptr.vmem [resolvable:$true] %s25_s17 }
   0x6   :  { %s2343_s19 = smov 8  }
   0x7   :  { %31 = dma.hbm_to_vmem [thread:$0]  %s24_s14, 1536, %s26_s17, [#allocation3], %s2342_s18, %s2342_s18, %s2343_s19  }
   0x8   :  { %2334 = dma.done.wait [#allocation5], 16  }
   0x9   :  { %2335 = vsyncadd [#allocation5], 4294967280 }
   0xa   :  { %2336 = dma.done.wait [#allocation3], 1536  }
   0xb   :  { %2337 = vsyncadd [#allocation3], 4294965760 }
   0xc   :  { %40 = sfence }
   0xd   :  { %s41_s0 = sld [smem:[#allocation2]]  ;;  %v46_v0 = vlaneseq  ;;  %s2344_s22 = smov [#allocation7]  }
   0xe   :  { %s1947_s1 = sld [smem:[#allocation2 + $0x2]]  ;;  %s1930_s23 = sshll.u32 %s2344_s22, 4  ;;  %s1931_s23 = int_to_ptr.vmem [resolvable:$true] %s1930_s23 }
   0xf   :  { %v2370_v1 = vshrl.u32 %v46_v0, 7  ;;  %s1948_s20 = sld [smem:[#allocation2 + $0x3]]  ;;  %s1932_s26 = sshll.u32 %s3049_s2, 4  ;;  %s1933_s26 = int_to_ptr.hbm [resolvable:$true] %s1932_s26 }
  0x10   :  { %s1946_s21 = sld [smem:[#allocation2 + $0x1]] }
  0x11   :  { %v48_v2 = vadd.s32 8, %v2370_v1  ;;  %v49_v3 = vadd.s32 16, %v2370_v1 }
  0x13   :  { %v61_v4 = vstv %s41_s0 }
  0x14   :  { %vm65_vm0 = vcmp.lt.s32.totalorder %v61_v4, 0  ;;  %v66_v5 = vsub.s32 0, %v61_v4  ;;  %v2374_v6 = vstv %s1947_s1 }
  0x15   :  { %v2378_v7 = vadd.s32 %v2374_v6, %v2370_v1  ;;  %v2381_v8 = vadd.s32 %v2374_v6, %v48_v2  ;;  %v2384_v9 = vadd.s32 %v2374_v6, %v49_v3 }
  0x16   :  { %v2386_v10 = vsel %vm65_vm0, %v66_v5, %v61_v4 }
  0x17   :  { %vm62_vm1 = vcmp.lt.s32.totalorder %v2378_v7, 0  ;;  %v63_v11 = vsub.s32 0, %v2378_v7  ;;  %vm422_vm2 = vcmp.lt.s32.totalorder %v2381_v8, 0  ;;  %v423_v12 = vsub.s32 0, %v2381_v8 }
  0x18   :  { %vm782_vm3 = vcmp.lt.s32.totalorder %v2384_v9, 0  ;;  %v783_v13 = vsub.s32 0, %v2384_v9  ;;  %v2398_v15 = vxor.u32 2147483648, %v2386_v10 }
  0x19   :  { %v64_v14 = vsel %vm62_vm1, %v63_v11, %v2378_v7  ;;  %v424_v18 = vsel %vm422_vm2, %v423_v12, %v2381_v8  ;;  %v1882_v7 = vld [vmem:[#allocation6] sm:$0xff] }
  0x1a   :  { %v68_v16 = vshrl.u32 %v64_v14, 31  ;;  %v71_v17 = vshll.u32 %v64_v14, 1  ;;  %v784_v19 = vsel %vm782_vm3, %v783_v13, %v2384_v9  ;;  %v428_v20 = vshrl.u32 %v424_v18, 31  ;;  %v1884_v9 = vld [vmem:[#allocation6 + $0x10] sm:$0xff] }
  0x1b   :  { %v431_v21 = vshll.u32 %v424_v18, 1  ;;  %v788_v22 = vshrl.u32 %v784_v19, 31  ;;  %v791_v23 = vshll.u32 %v784_v19, 1 }
  0x1c   :  { %v1949_v24 = vxor.u32 2147483648, %v68_v16  ;;  %v75_v25 = vsub.s32 %v68_v16, %v2386_v10  ;;  %v77_v26 = vadd.s32 1, %v71_v17  ;;  %v2013_v27 = vxor.u32 2147483648, %v428_v20 }
  0x1d   :  { %v435_v28 = vsub.s32 %v428_v20, %v2386_v10  ;;  %v437_v29 = vadd.s32 1, %v431_v21  ;;  %v2077_v30 = vxor.u32 2147483648, %v788_v22  ;;  %v795_v31 = vsub.s32 %v788_v22, %v2386_v10 }
  0x1e   :  { %vm74_vm4 = vcmp.ge.s32.totalorder %v1949_v24, %v2398_v15  ;;  %v797_v32 = vadd.s32 1, %v791_v23  ;;  %vm434_vm5 = vcmp.ge.s32.totalorder %v2013_v27, %v2398_v15 }
  0x1f   :  { %v76_v33 = vsel %vm74_vm4, %v75_v25, %v68_v16  ;;  %v78_v34 = vsel %vm74_vm4, %v77_v26, %v71_v17  ;;  %vm794_vm6 = vcmp.ge.s32.totalorder %v2077_v30, %v2398_v15  ;;  %v436_v38 = vsel %vm434_vm5, %v435_v28, %v428_v20 }
  0x20   :  { %v79_v35 = vshrl.u32 %v78_v34, 31  ;;  %v80_v36 = vshll.u32 %v76_v33, 1  ;;  %v82_v37 = vshll.u32 %v78_v34, 1  ;;  %v438_v39 = vsel %vm434_vm5, %v437_v29, %v431_v21 }
  0x21   :  { %v440_v40 = vshll.u32 %v436_v38, 1  ;;  %v796_v41 = vsel %vm794_vm6, %v795_v31, %v788_v22  ;;  %v798_v42 = vsel %vm794_vm6, %v797_v32, %v791_v23  ;;  %v439_v44 = vshrl.u32 %v438_v39, 31 }
  0x22   :  { %v81_v43 = vor.u32 %v80_v36, %v79_v35  ;;  %v442_v45 = vshll.u32 %v438_v39, 1  ;;  %v88_v46 = vadd.s32 1, %v82_v37  ;;  %v799_v47 = vshrl.u32 %v798_v42, 31 }
  0x23   :  { %v800_v48 = vshll.u32 %v796_v41, 1  ;;  %v802_v49 = vshll.u32 %v798_v42, 1  ;;  %v441_v52 = vor.u32 %v440_v40, %v439_v44  ;;  %v50_v25 = vadd.s32 24, %v2370_v1 }
  0x24   :  { %v1951_v50 = vxor.u32 2147483648, %v81_v43  ;;  %v86_v51 = vsub.s32 %v81_v43, %v2386_v10  ;;  %v448_v53 = vadd.s32 1, %v442_v45 }
  0x25   :  { %v801_v54 = vor.u32 %v800_v48, %v799_v47  ;;  %v2015_v55 = vxor.u32 2147483648, %v441_v52  ;;  %v446_v56 = vsub.s32 %v441_v52, %v2386_v10  ;;  %v808_v57 = vadd.s32 1, %v802_v49 }
  0x26   :  { %vm85_vm7 = vcmp.ge.s32.totalorder %v1951_v50, %v2398_v15  ;;  %v2425_v41 = vadd.s32 %v2374_v6, %v50_v25 }
  0x27   :  { %v87_v58 = vsel %vm85_vm7, %v86_v51, %v81_v43  ;;  %v89_v59 = vsel %vm85_vm7, %v88_v46, %v82_v37  ;;  %v2079_v60 = vxor.u32 2147483648, %v801_v54  ;;  %v806_v61 = vsub.s32 %v801_v54, %v2386_v10 }
  0x28   :  { %v90_v62 = vshrl.u32 %v89_v59, 31  ;;  %v91_v63 = vshll.u32 %v87_v58, 1  ;;  %v93_v2 = vshll.u32 %v89_v59, 1  ;;  %vm445_vm8 = vcmp.ge.s32.totalorder %v2015_v55, %v2398_v15 }
  0x29   :  { %v447_v3 = vsel %vm445_vm8, %v446_v56, %v441_v52  ;;  %v449_v4 = vsel %vm445_vm8, %v448_v53, %v442_v45  ;;  %vm805_vm9 = vcmp.ge.s32.totalorder %v2079_v60, %v2398_v15  ;;  %v1143_v56 = vsub.s32 0, %v2425_v41 }
  0x2a   :  { %v92_v5 = vor.u32 %v91_v63, %v90_v62  ;;  %v450_v11 = vshrl.u32 %v449_v4, 31  ;;  %v451_v12 = vshll.u32 %v447_v3, 1  ;;  %v99_v13 = vadd.s32 1, %v93_v2 }
  0x2b   :  { %v453_v14 = vshll.u32 %v449_v4, 1  ;;  %v807_v16 = vsel %vm805_vm9, %v806_v61, %v801_v54  ;;  %v809_v17 = vsel %vm805_vm9, %v808_v57, %v802_v49  ;;  %vm1142_vm15 = vcmp.lt.s32.totalorder %v2425_v41, 0 }
  0x2c   :  { %v1953_v18 = vxor.u32 2147483648, %v92_v5  ;;  %v97_v19 = vsub.s32 %v92_v5, %v2386_v10  ;;  %v452_v20 = vor.u32 %v451_v12, %v450_v11  ;;  %v810_v21 = vshrl.u32 %v809_v17, 31 }
  0x2d   :  { %v459_v22 = vadd.s32 1, %v453_v14  ;;  %v811_v23 = vshll.u32 %v807_v16, 1  ;;  %v813_v24 = vshll.u32 %v809_v17, 1 }
  0x2e   :  { %vm96_vm10 = vcmp.ge.s32.totalorder %v1953_v18, %v2398_v15  ;;  %v2017_v26 = vxor.u32 2147483648, %v452_v20  ;;  %v457_v27 = vsub.s32 %v452_v20, %v2386_v10 }
  0x2f   :  { %v98_v28 = vsel %vm96_vm10, %v97_v19, %v92_v5  ;;  %v100_v29 = vsel %vm96_vm10, %v99_v13, %v93_v2  ;;  %v812_v30 = vor.u32 %v811_v23, %v810_v21  ;;  %v819_v31 = vadd.s32 1, %v813_v24 }
  0x30   :  { %v101_v32 = vshrl.u32 %v100_v29, 31  ;;  %v102_v33 = vshll.u32 %v98_v28, 1  ;;  %v104_v34 = vshll.u32 %v100_v29, 1  ;;  %vm456_vm11 = vcmp.ge.s32.totalorder %v2017_v26, %v2398_v15 }
  0x31   :  { %v458_v35 = vsel %vm456_vm11, %v457_v27, %v452_v20  ;;  %v460_v36 = vsel %vm456_vm11, %v459_v22, %v453_v14  ;;  %v2081_v37 = vxor.u32 2147483648, %v812_v30  ;;  %v817_v38 = vsub.s32 %v812_v30, %v2386_v10 }
  0x32   :  { %v103_v1 = vor.u32 %v102_v33, %v101_v32  ;;  %v461_v39 = vshrl.u32 %v460_v36, 31  ;;  %v462_v40 = vshll.u32 %v458_v35, 1  ;;  %v110_v42 = vadd.s32 1, %v104_v34 }
  0x33   :  { %v464_v43 = vshll.u32 %v460_v36, 1  ;;  %vm816_vm12 = vcmp.ge.s32.totalorder %v2081_v37, %v2398_v15  ;;  %v2440_v19 = vsel %vm1142_vm15, %v1143_v56, %v2425_v41  ;;  %v1885_v41 = vld [vmem:[#allocation6 + $0x18] sm:$0xff] }
  0x34   :  { %v1955_v44 = vxor.u32 2147483648, %v103_v1  ;;  %v108_v45 = vsub.s32 %v103_v1, %v2386_v10  ;;  %v463_v46 = vor.u32 %v462_v40, %v461_v39  ;;  %v818_v47 = vsel %vm816_vm12, %v817_v38, %v812_v30 }
  0x35   :  { %v470_v48 = vadd.s32 1, %v464_v43  ;;  %v820_v49 = vsel %vm816_vm12, %v819_v31, %v813_v24  ;;  %v822_v50 = vshll.u32 %v818_v47, 1  ;;  %v1148_v39 = vshrl.u32 %v2440_v19, 31 }
  0x36   :  { %vm107_vm13 = vcmp.ge.s32.totalorder %v1955_v44, %v2398_v15  ;;  %v2019_v51 = vxor.u32 2147483648, %v463_v46  ;;  %v468_v52 = vsub.s32 %v463_v46, %v2386_v10  ;;  %v821_v53 = vshrl.u32 %v820_v49, 31 }
  0x37   :  { %v109_v6 = vsel %vm107_vm13, %v108_v45, %v103_v1  ;;  %v111_v54 = vsel %vm107_vm13, %v110_v42, %v104_v34  ;;  %v824_v55 = vshll.u32 %v820_v49, 1 }
  0x38   :  { %v112_v57 = vshrl.u32 %v111_v54, 31  ;;  %v113_v58 = vshll.u32 %v109_v6, 1  ;;  %v115_v59 = vshll.u32 %v111_v54, 1  ;;  %vm467_vm14 = vcmp.ge.s32.totalorder %v2019_v51, %v2398_v15 }
  0x39   :  { %v469_v60 = vsel %vm467_vm14, %v468_v52, %v463_v46  ;;  %v471_v61 = vsel %vm467_vm14, %v470_v48, %v464_v43  ;;  %v823_v62 = vor.u32 %v822_v50, %v821_v53  ;;  %v830_v4 = vadd.s32 1, %v824_v55 }
  0x3a   :  { %v114_v63 = vor.u32 %v113_v58, %v112_v57  ;;  %v472_v2 = vshrl.u32 %v471_v61, 31  ;;  %v473_v3 = vshll.u32 %v469_v60, 1  ;;  %v121_v5 = vadd.s32 1, %v115_v59 }
  0x3b   :  { %v475_v11 = vshll.u32 %v471_v61, 1  ;;  %v2083_v12 = vxor.u32 2147483648, %v823_v62  ;;  %v828_v13 = vsub.s32 %v823_v62, %v2386_v10  ;;  %v1151_v50 = vshll.u32 %v2440_v19, 1 }
  0x3c   :  { %v1957_v14 = vxor.u32 2147483648, %v114_v63  ;;  %v119_v16 = vsub.s32 %v114_v63, %v2386_v10  ;;  %v474_v17 = vor.u32 %v473_v3, %v472_v2  ;;  %v2141_v53 = vxor.u32 2147483648, %v1148_v39 }
  0x3d   :  { %v481_v18 = vadd.s32 1, %v475_v11  ;;  %vm827_vm0 = vcmp.ge.s32.totalorder %v2083_v12, %v2398_v15  ;;  %v1157_v19 = vadd.s32 1, %v1151_v50 }
  0x3e   :  { %vm118_vm4 = vcmp.ge.s32.totalorder %v1957_v14, %v2398_v15  ;;  %v2021_v20 = vxor.u32 2147483648, %v474_v17  ;;  %v479_v21 = vsub.s32 %v474_v17, %v2386_v10  ;;  %v829_v22 = vsel %vm827_vm0, %v828_v13, %v823_v62 }
  0x3f   :  { %v120_v23 = vsel %vm118_vm4, %v119_v16, %v114_v63  ;;  %v122_v24 = vsel %vm118_vm4, %v121_v5, %v115_v59  ;;  %v831_v25 = vsel %vm827_vm0, %v830_v4, %v824_v55  ;;  %v833_v26 = vshll.u32 %v829_v22, 1 }
  0x40   :  { %v123_v27 = vshrl.u32 %v122_v24, 31  ;;  %v124_v28 = vshll.u32 %v120_v23, 1  ;;  %v126_v29 = vshll.u32 %v122_v24, 1  ;;  %vm478_vm5 = vcmp.ge.s32.totalorder %v2021_v20, %v2398_v15 }
  0x41   :  { %v480_v30 = vsel %vm478_vm5, %v479_v21, %v474_v17  ;;  %v482_v31 = vsel %vm478_vm5, %v481_v18, %v475_v11  ;;  %v832_v32 = vshrl.u32 %v831_v25, 31  ;;  %v835_v33 = vshll.u32 %v831_v25, 1 }
  0x42   :  { %v125_v34 = vor.u32 %v124_v28, %v123_v27  ;;  %v483_v35 = vshrl.u32 %v482_v31, 31  ;;  %v484_v36 = vshll.u32 %v480_v30, 1  ;;  %v132_v37 = vadd.s32 1, %v126_v29 }
  0x43   :  { %v486_v38 = vshll.u32 %v482_v31, 1  ;;  %v834_v1 = vor.u32 %v833_v26, %v832_v32  ;;  %v841_v47 = vadd.s32 1, %v835_v33  ;;  %vm2455_vm9 = vcmp.ge.s32.totalorder %v2141_v53, %v2398_v15 }
  0x44   :  { %v1959_v40 = vxor.u32 2147483648, %v125_v34  ;;  %v130_v42 = vsub.s32 %v125_v34, %v2386_v10  ;;  %v485_v43 = vor.u32 %v484_v36, %v483_v35  ;;  %v1155_v18 = vsub.s32 %v1148_v39, %v2386_v10 }
  0x45   :  { %v492_v44 = vadd.s32 1, %v486_v38  ;;  %v2085_v45 = vxor.u32 2147483648, %v834_v1  ;;  %v839_v46 = vsub.s32 %v834_v1, %v2386_v10  ;;  %v2469_v36 = vsel %vm2455_vm9, %v1157_v19, %v1151_v50 }
  0x46   :  { %vm129_vm6 = vcmp.ge.s32.totalorder %v1959_v40, %v2398_v15  ;;  %v2023_v48 = vxor.u32 2147483648, %v485_v43  ;;  %v490_v49 = vsub.s32 %v485_v43, %v2386_v10  ;;  %v1156_v32 = vsel %vm2455_vm9, %v1155_v18, %v1148_v39 }
  0x47   :  { %v131_v51 = vsel %vm129_vm6, %v130_v42, %v125_v34  ;;  %v133_v52 = vsel %vm129_vm6, %v132_v37, %v126_v29  ;;  %vm838_vm7 = vcmp.ge.s32.totalorder %v2085_v45, %v2398_v15  ;;  %v1160_v39 = vshll.u32 %v1156_v32, 1 }
  0x48   :  { %v134_v6 = vshrl.u32 %v133_v52, 31  ;;  %v135_v54 = vshll.u32 %v131_v51, 1  ;;  %v137_v55 = vshll.u32 %v133_v52, 1  ;;  %vm489_vm8 = vcmp.ge.s32.totalorder %v2023_v48, %v2398_v15 }
  0x49   :  { %v491_v56 = vsel %vm489_vm8, %v490_v49, %v485_v43  ;;  %v493_v57 = vsel %vm489_vm8, %v492_v44, %v486_v38  ;;  %v840_v58 = vsel %vm838_vm7, %v839_v46, %v834_v1  ;;  %v842_v59 = vsel %vm838_vm7, %v841_v47, %v835_v33 }
  0x4a   :  { %v136_v60 = vor.u32 %v135_v54, %v134_v6  ;;  %v143_v61 = vadd.s32 1, %v137_v55  ;;  %v494_v62 = vshrl.u32 %v493_v57, 31  ;;  %v495_v63 = vshll.u32 %v491_v56, 1 }
  0x4b   :  { %v497_v2 = vshll.u32 %v493_v57, 1  ;;  %v843_v3 = vshrl.u32 %v842_v59, 31  ;;  %v844_v4 = vshll.u32 %v840_v58, 1  ;;  %v846_v5 = vshll.u32 %v842_v59, 1 }
  0x4c   :  { %v1961_v11 = vxor.u32 2147483648, %v136_v60  ;;  %v141_v12 = vsub.s32 %v136_v60, %v2386_v10  ;;  %v496_v13 = vor.u32 %v495_v63, %v494_v62  ;;  %v1159_v50 = vshrl.u32 %v2469_v36, 31 }
  0x4d   :  { %v503_v16 = vadd.s32 1, %v497_v2  ;;  %v845_v17 = vor.u32 %v844_v4, %v843_v3  ;;  %v852_v22 = vadd.s32 1, %v846_v5 }
  0x4e   :  { %vm140_vm10 = vcmp.ge.s32.totalorder %v1961_v11, %v2398_v15  ;;  %v2025_v20 = vxor.u32 2147483648, %v496_v13  ;;  %v501_v21 = vsub.s32 %v496_v13, %v2386_v10  ;;  %v1161_v18 = vor.u32 %v1160_v39, %v1159_v50 }
  0x4f   :  { %v142_v23 = vsel %vm140_vm10, %v141_v12, %v136_v60  ;;  %v144_v24 = vsel %vm140_vm10, %v143_v61, %v137_v55  ;;  %v2087_v25 = vxor.u32 2147483648, %v845_v17  ;;  %v850_v26 = vsub.s32 %v845_v17, %v2386_v10 }
  0x50   :  { %v145_v27 = vshrl.u32 %v144_v24, 31  ;;  %v146_v28 = vshll.u32 %v142_v23, 1  ;;  %v148_v29 = vshll.u32 %v144_v24, 1  ;;  %vm500_vm11 = vcmp.ge.s32.totalorder %v2025_v20, %v2398_v15 }
  0x51   :  { %v502_v30 = vsel %vm500_vm11, %v501_v21, %v496_v13  ;;  %v504_v31 = vsel %vm500_vm11, %v503_v16, %v497_v2  ;;  %vm849_vm12 = vcmp.ge.s32.totalorder %v2087_v25, %v2398_v15  ;;  %v2143_v32 = vxor.u32 2147483648, %v1161_v18 }
  0x52   :  { %v147_v33 = vor.u32 %v146_v28, %v145_v27  ;;  %v505_v34 = vshrl.u32 %v504_v31, 31  ;;  %v506_v35 = vshll.u32 %v502_v30, 1  ;;  %v154_v37 = vadd.s32 1, %v148_v29 }
  0x53   :  { %v508_v38 = vshll.u32 %v504_v31, 1  ;;  %v851_v1 = vsel %vm849_vm12, %v850_v26, %v845_v17  ;;  %v853_v40 = vsel %vm849_vm12, %v852_v22, %v846_v5  ;;  %v1162_v30 = vshll.u32 %v2469_v36, 1 }
  0x54   :  { %v1963_v42 = vxor.u32 2147483648, %v147_v33  ;;  %v152_v43 = vsub.s32 %v147_v33, %v2386_v10  ;;  %v507_v44 = vor.u32 %v506_v35, %v505_v34  ;;  %v854_v45 = vshrl.u32 %v853_v40, 31 }
  0x55   :  { %v514_v46 = vadd.s32 1, %v508_v38  ;;  %v855_v47 = vshll.u32 %v851_v1, 1  ;;  %v857_v48 = vshll.u32 %v853_v40, 1  ;;  %v1168_v1 = vadd.s32 1, %v1162_v30 }
  0x56   :  { %vm151_vm13 = vcmp.ge.s32.totalorder %v1963_v42, %v2398_v15  ;;  %v2027_v49 = vxor.u32 2147483648, %v507_v44  ;;  %v512_v51 = vsub.s32 %v507_v44, %v2386_v10  ;;  %vm1165_vm7 = vcmp.ge.s32.totalorder %v2143_v32, %v2398_v15 }
  0x57   :  { %v153_v52 = vsel %vm151_vm13, %v152_v43, %v147_v33  ;;  %v155_v53 = vsel %vm151_vm13, %v154_v37, %v148_v29  ;;  %v856_v6 = vor.u32 %v855_v47, %v854_v45  ;;  %v863_v54 = vadd.s32 1, %v857_v48 }
  0x58   :  { %v156_v55 = vshrl.u32 %v155_v53, 31  ;;  %v157_v56 = vshll.u32 %v153_v52, 1  ;;  %v159_v57 = vshll.u32 %v155_v53, 1  ;;  %vm511_vm14 = vcmp.ge.s32.totalorder %v2027_v49, %v2398_v15 }
  0x59   :  { %v513_v58 = vsel %vm511_vm14, %v512_v51, %v507_v44  ;;  %v515_v59 = vsel %vm511_vm14, %v514_v46, %v508_v38  ;;  %v2089_v60 = vxor.u32 2147483648, %v856_v6  ;;  %v861_v61 = vsub.s32 %v856_v6, %v2386_v10 }
  0x5a   :  { %v158_v62 = vor.u32 %v157_v56, %v156_v55  ;;  %v516_v63 = vshrl.u32 %v515_v59, 31  ;;  %v517_v2 = vshll.u32 %v513_v58, 1  ;;  %v165_v3 = vadd.s32 1, %v159_v57 }
  0x5b   :  { %v519_v4 = vshll.u32 %v515_v59, 1  ;;  %vm860_vm0 = vcmp.ge.s32.totalorder %v2089_v60, %v2398_v15  ;;  %v1166_v42 = vsub.s32 %v1161_v18, %v2386_v10  ;;  %v1169_v39 = vsel %vm1165_vm7, %v1168_v1, %v1162_v30 }
  0x5c   :  { %v1965_v5 = vxor.u32 2147483648, %v158_v62  ;;  %v163_v11 = vsub.s32 %v158_v62, %v2386_v10  ;;  %v518_v12 = vor.u32 %v517_v2, %v516_v63  ;;  %v862_v13 = vsel %vm860_vm0, %v861_v61, %v856_v6 }
  0x5d   :  { %v525_v14 = vadd.s32 1, %v519_v4  ;;  %v864_v16 = vsel %vm860_vm0, %v863_v54, %v857_v48  ;;  %v866_v17 = vshll.u32 %v862_v13, 1  ;;  %v1167_v51 = vsel %vm1165_vm7, %v1166_v42, %v1161_v18 }
  0x5e   :  { %vm162_vm4 = vcmp.ge.s32.totalorder %v1965_v5, %v2398_v15  ;;  %v2029_v19 = vxor.u32 2147483648, %v518_v12  ;;  %v523_v20 = vsub.s32 %v518_v12, %v2386_v10  ;;  %v865_v21 = vshrl.u32 %v864_v16, 31 }
  0x5f   :  { %v164_v22 = vsel %vm162_vm4, %v163_v11, %v158_v62  ;;  %v166_v23 = vsel %vm162_vm4, %v165_v3, %v159_v57  ;;  %v868_v24 = vshll.u32 %v864_v16, 1  ;;  %v1170_v54 = vshrl.u32 %v1169_v39, 31 }
  0x60   :  { %v167_v25 = vshrl.u32 %v166_v23, 31  ;;  %v168_v26 = vshll.u32 %v164_v22, 1  ;;  %vm522_vm5 = vcmp.ge.s32.totalorder %v2029_v19, %v2398_v15  ;;  %v867_v29 = vor.u32 %v866_v17, %v865_v21 }
  0x61   :  { %v524_v27 = vsel %vm522_vm5, %v523_v20, %v518_v12  ;;  %v526_v28 = vsel %vm522_vm5, %v525_v14, %v519_v4  ;;  %v874_v31 = vadd.s32 1, %v868_v24  ;;  %v170_v43 = vshll.u32 %v166_v23, 1 }
  0x62   :  { %v527_v33 = vshrl.u32 %v526_v28, 31  ;;  %v528_v34 = vshll.u32 %v524_v27, 1  ;;  %v2091_v35 = vxor.u32 2147483648, %v867_v29  ;;  %v872_v37 = vsub.s32 %v867_v29, %v2386_v10 }
  0x63   :  { %v169_v38 = vor.u32 %v168_v26, %v167_v25  ;;  %v530_v49 = vshll.u32 %v526_v28, 1  ;;  %v176_v52 = vadd.s32 1, %v170_v43  ;;  %v1171_v58 = vshll.u32 %v1167_v51, 1 }
  0x64   :  { %vm871_vm6 = vcmp.ge.s32.totalorder %v2091_v35, %v2398_v15  ;;  %v529_v44 = vor.u32 %v528_v34, %v527_v33  ;;  %v1173_v16 = vshll.u32 %v1169_v39, 1 }
  0x65   :  { %v873_v40 = vsel %vm871_vm6, %v872_v37, %v867_v29  ;;  %v875_v45 = vsel %vm871_vm6, %v874_v31, %v868_v24  ;;  %v1967_v46 = vxor.u32 2147483648, %v169_v38  ;;  %v174_v50 = vsub.s32 %v169_v38, %v2386_v10 }
  0x66   :  { %v877_v36 = vshll.u32 %v873_v40, 1  ;;  %v876_v47 = vshrl.u32 %v875_v45, 31  ;;  %v879_v48 = vshll.u32 %v875_v45, 1  ;;  %v2031_v53 = vxor.u32 2147483648, %v529_v44 }
  0x67   :  { %vm173_vm8 = vcmp.ge.s32.totalorder %v1967_v46, %v2398_v15  ;;  %v534_v59 = vsub.s32 %v529_v44, %v2386_v10  ;;  %v536_v60 = vadd.s32 1, %v530_v49  ;;  %v1172_v3 = vor.u32 %v1171_v58, %v1170_v54 }
  0x68   :  { %v878_v6 = vor.u32 %v877_v36, %v876_v47  ;;  %v885_v57 = vadd.s32 1, %v879_v48  ;;  %v175_v61 = vsel %vm173_vm8, %v174_v50, %v169_v38  ;;  %v177_v62 = vsel %vm173_vm8, %v176_v52, %v170_v43 }
  0x69   :  { %vm533_vm9 = vcmp.ge.s32.totalorder %v2031_v53, %v2398_v15  ;;  %v178_v4 = vshrl.u32 %v177_v62, 31  ;;  %v179_v5 = vshll.u32 %v175_v61, 1  ;;  %v2145_v20 = vxor.u32 2147483648, %v1172_v3 }
  0x6a   :  { %v2093_v55 = vxor.u32 2147483648, %v878_v6  ;;  %v883_v56 = vsub.s32 %v878_v6, %v2386_v10  ;;  %v535_v11 = vsel %vm533_vm9, %v534_v59, %v529_v44  ;;  %v537_v12 = vsel %vm533_vm9, %v536_v60, %v530_v49 }
  0x6b   :  { %v538_v17 = vshrl.u32 %v537_v12, 31  ;;  %v539_v18 = vshll.u32 %v535_v11, 1  ;;  %v180_v21 = vor.u32 %v179_v5, %v178_v4  ;;  %v1177_v24 = vsub.s32 %v1172_v3, %v2386_v10 }
  0x6c   :  { %vm882_vm10 = vcmp.ge.s32.totalorder %v2093_v55, %v2398_v15  ;;  %v1179_v25 = vadd.s32 1, %v1173_v16  ;;  %v181_v26 = vshll.u32 %v177_v62, 1  ;;  %vm1176_vm11 = vcmp.ge.s32.totalorder %v2145_v20, %v2398_v15 }
  0x6d   :  { %v884_v63 = vsel %vm882_vm10, %v883_v56, %v878_v6  ;;  %v886_v2 = vsel %vm882_vm10, %v885_v57, %v879_v48  ;;  %v540_v27 = vor.u32 %v539_v18, %v538_v17  ;;  %v1969_v28 = vxor.u32 2147483648, %v180_v21 }
  0x6e   :  { %v887_v13 = vshrl.u32 %v886_v2, 31  ;;  %v888_v14 = vshll.u32 %v884_v63, 1  ;;  %v890_v22 = vshll.u32 %v886_v2, 1  ;;  %v541_v31 = vshll.u32 %v537_v12, 1 }
  0x6f   :  { %v1178_v32 = vsel %vm1176_vm11, %v1177_v24, %v1172_v3  ;;  %v1180_v33 = vsel %vm1176_vm11, %v1179_v25, %v1173_v16  ;;  %v185_v34 = vsub.s32 %v180_v21, %v2386_v10  ;;  %v187_v35 = vadd.s32 1, %v181_v26 }
  0x70   :  { %v889_v19 = vor.u32 %v888_v14, %v887_v13  ;;  %v896_v30 = vadd.s32 1, %v890_v22  ;;  %v2033_v37 = vxor.u32 2147483648, %v540_v27  ;;  %vm184_vm13 = vcmp.ge.s32.totalorder %v1969_v28, %v2398_v15 }
  0x71   :  { %v1181_v40 = vshrl.u32 %v1180_v33, 31  ;;  %v1182_v42 = vshll.u32 %v1178_v32, 1  ;;  %v545_v43 = vsub.s32 %v540_v27, %v2386_v10  ;;  %v547_v44 = vadd.s32 1, %v541_v31 }
  0x72   :  { %v2095_v23 = vxor.u32 2147483648, %v889_v19  ;;  %v894_v29 = vsub.s32 %v889_v19, %v2386_v10  ;;  %v186_v45 = vsel %vm184_vm13, %v185_v34, %v180_v21  ;;  %v188_v36 = vsel %vm184_vm13, %v187_v35, %v181_v26 }
  0x73   :  { %vm544_vm14 = vcmp.ge.s32.totalorder %v2033_v37, %v2398_v15  ;;  %v1183_v48 = vor.u32 %v1182_v42, %v1181_v40  ;;  %v189_v39 = vshrl.u32 %v188_v36, 31  ;;  %v190_v49 = vshll.u32 %v186_v45, 1 }
  0x74   :  { %vm893_vm12 = vcmp.ge.s32.totalorder %v2095_v23, %v2398_v15  ;;  %v546_v51 = vsel %vm544_vm14, %v545_v43, %v540_v27  ;;  %v548_v50 = vsel %vm544_vm14, %v547_v44, %v541_v31  ;;  %v1184_v53 = vshll.u32 %v1180_v33, 1 }
  0x75   :  { %v895_v38 = vsel %vm893_vm12, %v894_v29, %v889_v19  ;;  %v897_v1 = vsel %vm893_vm12, %v896_v30, %v890_v22  ;;  %v549_v6 = vshrl.u32 %v548_v50, 31  ;;  %v550_v54 = vshll.u32 %v546_v51, 1 }
  0x76   :  { %v898_v46 = vshrl.u32 %v897_v1, 31  ;;  %v899_v47 = vshll.u32 %v895_v38, 1  ;;  %v2147_v55 = vxor.u32 2147483648, %v1183_v48  ;;  %v191_v56 = vor.u32 %v190_v49, %v189_v39 }
  0x77   :  { %v901_v57 = vshll.u32 %v897_v1, 1  ;;  %v1188_v59 = vsub.s32 %v1183_v48, %v2386_v10  ;;  %v1190_v60 = vadd.s32 1, %v1184_v53  ;;  %v192_v61 = vshll.u32 %v188_v36, 1 }
  0x78   :  { %v900_v52 = vor.u32 %v899_v47, %v898_v46  ;;  %v551_v62 = vor.u32 %v550_v54, %v549_v6  ;;  %vm1187_vm0 = vcmp.ge.s32.totalorder %v2147_v55, %v2398_v15  ;;  %v1971_v63 = vxor.u32 2147483648, %v191_v56 }
  0x79   :  { %v907_v3 = vadd.s32 1, %v901_v57  ;;  %v552_v4 = vshll.u32 %v548_v50, 1  ;;  %v1189_v5 = vsel %vm1187_vm0, %v1188_v59, %v1183_v48  ;;  %v1191_v11 = vsel %vm1187_vm0, %v1190_v60, %v1184_v53 }
  0x7a   :  { %v2097_v58 = vxor.u32 2147483648, %v900_v52  ;;  %v905_v2 = vsub.s32 %v900_v52, %v2386_v10  ;;  %v196_v12 = vsub.s32 %v191_v56, %v2386_v10  ;;  %v198_v13 = vadd.s32 1, %v192_v61 }
  0x7b   :  { %v2035_v14 = vxor.u32 2147483648, %v551_v62  ;;  %vm195_vm5 = vcmp.ge.s32.totalorder %v1971_v63, %v2398_v15  ;;  %v1192_v18 = vshrl.u32 %v1191_v11, 31  ;;  %v1193_v19 = vshll.u32 %v1189_v5, 1 }
  0x7c   :  { %vm904_vm4 = vcmp.ge.s32.totalorder %v2097_v58, %v2398_v15  ;;  %v556_v20 = vsub.s32 %v551_v62, %v2386_v10  ;;  %v558_v21 = vadd.s32 1, %v552_v4  ;;  %v197_v22 = vsel %vm195_vm5, %v196_v12, %v191_v56 }
  0x7d   :  { %v906_v16 = vsel %vm904_vm4, %v905_v2, %v900_v52  ;;  %v908_v17 = vsel %vm904_vm4, %v907_v3, %v901_v57  ;;  %v199_v23 = vsel %vm195_vm5, %v198_v13, %v192_v61  ;;  %vm555_vm6 = vcmp.ge.s32.totalorder %v2035_v14, %v2398_v15 }
  0x7e   :  { %v909_v24 = vshrl.u32 %v908_v17, 31  ;;  %v910_v25 = vshll.u32 %v906_v16, 1  ;;  %v1194_v26 = vor.u32 %v1193_v19, %v1192_v18  ;;  %v200_v27 = vshrl.u32 %v199_v23, 31 }
  0x7f   :  { %v201_v28 = vshll.u32 %v197_v22, 1  ;;  %v557_v29 = vsel %vm555_vm6, %v556_v20, %v551_v62  ;;  %v559_v30 = vsel %vm555_vm6, %v558_v21, %v552_v4  ;;  %v1195_v32 = vshll.u32 %v1191_v11, 1 }
  0x80   :  { %v911_v31 = vor.u32 %v910_v25, %v909_v24  ;;  %v560_v33 = vshrl.u32 %v559_v30, 31  ;;  %v561_v34 = vshll.u32 %v557_v29, 1  ;;  %v2149_v35 = vxor.u32 2147483648, %v1194_v26 }
  0x81   :  { %v202_v37 = vor.u32 %v201_v28, %v200_v27  ;;  %v912_v38 = vshll.u32 %v908_v17, 1  ;;  %v1199_v40 = vsub.s32 %v1194_v26, %v2386_v10  ;;  %v1201_v42 = vadd.s32 1, %v1195_v32 }
  0x82   :  { %v2099_v1 = vxor.u32 2147483648, %v911_v31  ;;  %v203_v43 = vshll.u32 %v199_v23, 1  ;;  %v562_v44 = vor.u32 %v561_v34, %v560_v33  ;;  %vm1198_vm7 = vcmp.ge.s32.totalorder %v2149_v35, %v2398_v15 }
  0x83   :  { %v1973_v45 = vxor.u32 2147483648, %v202_v37  ;;  %v916_v36 = vsub.s32 %v911_v31, %v2386_v10  ;;  %v918_v46 = vadd.s32 1, %v912_v38  ;;  %v563_v47 = vshll.u32 %v559_v30, 1 }
  0x84   :  { %vm915_vm8 = vcmp.ge.s32.totalorder %v2099_v1, %v2398_v15  ;;  %v1200_v48 = vsel %vm1198_vm7, %v1199_v40, %v1194_v26  ;;  %v1202_v39 = vsel %vm1198_vm7, %v1201_v42, %v1195_v32  ;;  %v207_v49 = vsub.s32 %v202_v37, %v2386_v10 }
  0x85   :  { %v209_v51 = vadd.s32 1, %v203_v43  ;;  %v2037_v50 = vxor.u32 2147483648, %v562_v44  ;;  %vm206_vm9 = vcmp.ge.s32.totalorder %v1973_v45, %v2398_v15  ;;  %v917_v52 = vsel %vm915_vm8, %v916_v36, %v911_v31 }
  0x86   :  { %v919_v53 = vsel %vm915_vm8, %v918_v46, %v912_v38  ;;  %v1203_v6 = vshrl.u32 %v1202_v39, 31  ;;  %v1204_v54 = vshll.u32 %v1200_v48, 1  ;;  %v567_v55 = vsub.s32 %v562_v44, %v2386_v10 }
  0x87   :  { %v569_v56 = vadd.s32 1, %v563_v47  ;;  %v208_v57 = vsel %vm206_vm9, %v207_v49, %v202_v37  ;;  %v210_v58 = vsel %vm206_vm9, %v209_v51, %v203_v43  ;;  %vm566_vm10 = vcmp.ge.s32.totalorder %v2037_v50, %v2398_v15 }
  0x88   :  { %v920_v59 = vshrl.u32 %v919_v53, 31  ;;  %v921_v60 = vshll.u32 %v917_v52, 1  ;;  %v1205_v61 = vor.u32 %v1204_v54, %v1203_v6  ;;  %v211_v62 = vshrl.u32 %v210_v58, 31 }
  0x89   :  { %v212_v63 = vshll.u32 %v208_v57, 1  ;;  %v568_v2 = vsel %vm566_vm10, %v567_v55, %v562_v44  ;;  %v570_v3 = vsel %vm566_vm10, %v569_v56, %v563_v47  ;;  %v1206_v5 = vshll.u32 %v1202_v39, 1 }
  0x8a   :  { %v922_v4 = vor.u32 %v921_v60, %v920_v59  ;;  %v571_v11 = vshrl.u32 %v570_v3, 31  ;;  %v572_v12 = vshll.u32 %v568_v2, 1  ;;  %v2151_v13 = vxor.u32 2147483648, %v1205_v61 }
  0x8b   :  { %v213_v14 = vor.u32 %v212_v63, %v211_v62  ;;  %v923_v16 = vshll.u32 %v919_v53, 1  ;;  %v1210_v18 = vsub.s32 %v1205_v61, %v2386_v10  ;;  %v1212_v19 = vadd.s32 1, %v1206_v5 }
  0x8c   :  { %v2101_v17 = vxor.u32 2147483648, %v922_v4  ;;  %v214_v20 = vshll.u32 %v210_v58, 1  ;;  %v573_v21 = vor.u32 %v572_v12, %v571_v11  ;;  %vm1209_vm11 = vcmp.ge.s32.totalorder %v2151_v13, %v2398_v15 }
  0x8d   :  { %v1975_v22 = vxor.u32 2147483648, %v213_v14  ;;  %v927_v23 = vsub.s32 %v922_v4, %v2386_v10  ;;  %v929_v24 = vadd.s32 1, %v923_v16  ;;  %v574_v25 = vshll.u32 %v570_v3, 1 }
  0x8e   :  { %vm926_vm12 = vcmp.ge.s32.totalorder %v2101_v17, %v2398_v15  ;;  %v1211_v26 = vsel %vm1209_vm11, %v1210_v18, %v1205_v61  ;;  %v1213_v27 = vsel %vm1209_vm11, %v1212_v19, %v1206_v5  ;;  %v218_v28 = vsub.s32 %v213_v14, %v2386_v10 }
  0x8f   :  { %v220_v29 = vadd.s32 1, %v214_v20  ;;  %v2039_v30 = vxor.u32 2147483648, %v573_v21  ;;  %vm217_vm13 = vcmp.ge.s32.totalorder %v1975_v22, %v2398_v15  ;;  %v928_v31 = vsel %vm926_vm12, %v927_v23, %v922_v4 }
  0x90   :  { %v930_v32 = vsel %vm926_vm12, %v929_v24, %v923_v16  ;;  %v1214_v33 = vshrl.u32 %v1213_v27, 31  ;;  %v1215_v34 = vshll.u32 %v1211_v26, 1  ;;  %v578_v35 = vsub.s32 %v573_v21, %v2386_v10 }
  0x91   :  { %v580_v37 = vadd.s32 1, %v574_v25  ;;  %v219_v38 = vsel %vm217_vm13, %v218_v28, %v213_v14  ;;  %v221_v1 = vsel %vm217_vm13, %v220_v29, %v214_v20  ;;  %vm577_vm14 = vcmp.ge.s32.totalorder %v2039_v30, %v2398_v15 }
  0x92   :  { %v931_v40 = vshrl.u32 %v930_v32, 31  ;;  %v932_v42 = vshll.u32 %v928_v31, 1  ;;  %v1216_v43 = vor.u32 %v1215_v34, %v1214_v33  ;;  %v222_v44 = vshrl.u32 %v221_v1, 31 }
  0x93   :  { %v223_v45 = vshll.u32 %v219_v38, 1  ;;  %v579_v36 = vsel %vm577_vm14, %v578_v35, %v573_v21  ;;  %v581_v46 = vsel %vm577_vm14, %v580_v37, %v574_v25  ;;  %v1217_v48 = vshll.u32 %v1213_v27, 1 }
  0x94   :  { %v933_v47 = vor.u32 %v932_v42, %v931_v40  ;;  %v582_v39 = vshrl.u32 %v581_v46, 31  ;;  %v583_v49 = vshll.u32 %v579_v36, 1  ;;  %v2153_v51 = vxor.u32 2147483648, %v1216_v43 }
  0x95   :  { %v224_v50 = vor.u32 %v223_v45, %v222_v44  ;;  %v934_v52 = vshll.u32 %v930_v32, 1  ;;  %v1221_v6 = vsub.s32 %v1216_v43, %v2386_v10  ;;  %v1223_v54 = vadd.s32 1, %v1217_v48 }
  0x96   :  { %v2103_v53 = vxor.u32 2147483648, %v933_v47  ;;  %v225_v55 = vshll.u32 %v221_v1, 1  ;;  %v584_v56 = vor.u32 %v583_v49, %v582_v39  ;;  %vm1220_vm0 = vcmp.ge.s32.totalorder %v2153_v51, %v2398_v15 }
  0x97   :  { %v1977_v57 = vxor.u32 2147483648, %v224_v50  ;;  %v938_v58 = vsub.s32 %v933_v47, %v2386_v10  ;;  %v940_v59 = vadd.s32 1, %v934_v52  ;;  %v585_v60 = vshll.u32 %v581_v46, 1 }
  0x98   :  { %vm937_vm4 = vcmp.ge.s32.totalorder %v2103_v53, %v2398_v15  ;;  %v1222_v61 = vsel %vm1220_vm0, %v1221_v6, %v1216_v43  ;;  %v1224_v62 = vsel %vm1220_vm0, %v1223_v54, %v1217_v48  ;;  %v229_v63 = vsub.s32 %v224_v50, %v2386_v10 }
  0x99   :  { %v231_v2 = vadd.s32 1, %v225_v55  ;;  %v2041_v3 = vxor.u32 2147483648, %v584_v56  ;;  %vm228_vm5 = vcmp.ge.s32.totalorder %v1977_v57, %v2398_v15  ;;  %v939_v4 = vsel %vm937_vm4, %v938_v58, %v933_v47 }
  0x9a   :  { %v941_v5 = vsel %vm937_vm4, %v940_v59, %v934_v52  ;;  %v1225_v11 = vshrl.u32 %v1224_v62, 31  ;;  %v1226_v12 = vshll.u32 %v1222_v61, 1  ;;  %v589_v13 = vsub.s32 %v584_v56, %v2386_v10 }
  0x9b   :  { %v591_v14 = vadd.s32 1, %v585_v60  ;;  %v230_v16 = vsel %vm228_vm5, %v229_v63, %v224_v50  ;;  %v232_v17 = vsel %vm228_vm5, %v231_v2, %v225_v55  ;;  %vm588_vm6 = vcmp.ge.s32.totalorder %v2041_v3, %v2398_v15 }
  0x9c   :  { %v942_v18 = vshrl.u32 %v941_v5, 31  ;;  %v943_v19 = vshll.u32 %v939_v4, 1  ;;  %v1227_v20 = vor.u32 %v1226_v12, %v1225_v11  ;;  %v233_v21 = vshrl.u32 %v232_v17, 31 }
  0x9d   :  { %v234_v22 = vshll.u32 %v230_v16, 1  ;;  %v590_v23 = vsel %vm588_vm6, %v589_v13, %v584_v56  ;;  %v592_v24 = vsel %vm588_vm6, %v591_v14, %v585_v60  ;;  %v1228_v26 = vshll.u32 %v1224_v62, 1 }
  0x9e   :  { %v944_v25 = vor.u32 %v943_v19, %v942_v18  ;;  %v593_v27 = vshrl.u32 %v592_v24, 31  ;;  %v594_v28 = vshll.u32 %v590_v23, 1  ;;  %v2155_v29 = vxor.u32 2147483648, %v1227_v20 }
  0x9f   :  { %v235_v30 = vor.u32 %v234_v22, %v233_v21  ;;  %v945_v31 = vshll.u32 %v941_v5, 1  ;;  %v1232_v33 = vsub.s32 %v1227_v20, %v2386_v10  ;;  %v1234_v34 = vadd.s32 1, %v1228_v26 }
  0xa0   :  { %v2105_v32 = vxor.u32 2147483648, %v944_v25  ;;  %v236_v35 = vshll.u32 %v232_v17, 1  ;;  %v595_v37 = vor.u32 %v594_v28, %v593_v27  ;;  %vm1231_vm7 = vcmp.ge.s32.totalorder %v2155_v29, %v2398_v15 }
  0xa1   :  { %v1979_v38 = vxor.u32 2147483648, %v235_v30  ;;  %v949_v1 = vsub.s32 %v944_v25, %v2386_v10  ;;  %v951_v40 = vadd.s32 1, %v945_v31  ;;  %v596_v42 = vshll.u32 %v592_v24, 1 }
  0xa2   :  { %vm948_vm8 = vcmp.ge.s32.totalorder %v2105_v32, %v2398_v15  ;;  %v1233_v43 = vsel %vm1231_vm7, %v1232_v33, %v1227_v20  ;;  %v1235_v44 = vsel %vm1231_vm7, %v1234_v34, %v1228_v26  ;;  %v240_v45 = vsub.s32 %v235_v30, %v2386_v10 }
  0xa3   :  { %v242_v36 = vadd.s32 1, %v236_v35  ;;  %v2043_v46 = vxor.u32 2147483648, %v595_v37  ;;  %vm239_vm9 = vcmp.ge.s32.totalorder %v1979_v38, %v2398_v15  ;;  %v950_v47 = vsel %vm948_vm8, %v949_v1, %v944_v25 }
  0xa4   :  { %v952_v48 = vsel %vm948_vm8, %v951_v40, %v945_v31  ;;  %v1236_v39 = vshrl.u32 %v1235_v44, 31  ;;  %v1237_v49 = vshll.u32 %v1233_v43, 1  ;;  %v600_v51 = vsub.s32 %v595_v37, %v2386_v10 }
  0xa5   :  { %v602_v50 = vadd.s32 1, %v596_v42  ;;  %v241_v52 = vsel %vm239_vm9, %v240_v45, %v235_v30  ;;  %v243_v53 = vsel %vm239_vm9, %v242_v36, %v236_v35  ;;  %vm599_vm10 = vcmp.ge.s32.totalorder %v2043_v46, %v2398_v15 }
  0xa6   :  { %v953_v6 = vshrl.u32 %v952_v48, 31  ;;  %v954_v54 = vshll.u32 %v950_v47, 1  ;;  %v1238_v55 = vor.u32 %v1237_v49, %v1236_v39  ;;  %v244_v56 = vshrl.u32 %v243_v53, 31 }
  0xa7   :  { %v245_v57 = vshll.u32 %v241_v52, 1  ;;  %v601_v58 = vsel %vm599_vm10, %v600_v51, %v595_v37  ;;  %v603_v59 = vsel %vm599_vm10, %v602_v50, %v596_v42  ;;  %v1239_v61 = vshll.u32 %v1235_v44, 1 }
  0xa8   :  { %v955_v60 = vor.u32 %v954_v54, %v953_v6  ;;  %v604_v62 = vshrl.u32 %v603_v59, 31  ;;  %v605_v63 = vshll.u32 %v601_v58, 1  ;;  %v2157_v2 = vxor.u32 2147483648, %v1238_v55 }
  0xa9   :  { %v246_v3 = vor.u32 %v245_v57, %v244_v56  ;;  %v956_v4 = vshll.u32 %v952_v48, 1  ;;  %v1243_v11 = vsub.s32 %v1238_v55, %v2386_v10  ;;  %v1245_v12 = vadd.s32 1, %v1239_v61 }
  0xaa   :  { %v2107_v5 = vxor.u32 2147483648, %v955_v60  ;;  %v247_v13 = vshll.u32 %v243_v53, 1  ;;  %v606_v14 = vor.u32 %v605_v63, %v604_v62  ;;  %vm1242_vm11 = vcmp.ge.s32.totalorder %v2157_v2, %v2398_v15 }
  0xab   :  { %v1981_v16 = vxor.u32 2147483648, %v246_v3  ;;  %v960_v17 = vsub.s32 %v955_v60, %v2386_v10  ;;  %v962_v18 = vadd.s32 1, %v956_v4  ;;  %v607_v19 = vshll.u32 %v603_v59, 1 }
  0xac   :  { %vm959_vm12 = vcmp.ge.s32.totalorder %v2107_v5, %v2398_v15  ;;  %v1244_v20 = vsel %vm1242_vm11, %v1243_v11, %v1238_v55  ;;  %v1246_v21 = vsel %vm1242_vm11, %v1245_v12, %v1239_v61  ;;  %v251_v22 = vsub.s32 %v246_v3, %v2386_v10 }
  0xad   :  { %v253_v23 = vadd.s32 1, %v247_v13  ;;  %v2045_v24 = vxor.u32 2147483648, %v606_v14  ;;  %vm250_vm13 = vcmp.ge.s32.totalorder %v1981_v16, %v2398_v15  ;;  %v961_v25 = vsel %vm959_vm12, %v960_v17, %v955_v60 }
  0xae   :  { %v963_v26 = vsel %vm959_vm12, %v962_v18, %v956_v4  ;;  %v1247_v27 = vshrl.u32 %v1246_v21, 31  ;;  %v1248_v28 = vshll.u32 %v1244_v20, 1  ;;  %v611_v29 = vsub.s32 %v606_v14, %v2386_v10 }
  0xaf   :  { %v613_v30 = vadd.s32 1, %v607_v19  ;;  %v252_v31 = vsel %vm250_vm13, %v251_v22, %v246_v3  ;;  %v254_v32 = vsel %vm250_vm13, %v253_v23, %v247_v13  ;;  %vm610_vm14 = vcmp.ge.s32.totalorder %v2045_v24, %v2398_v15 }
  0xb0   :  { %v964_v33 = vshrl.u32 %v963_v26, 31  ;;  %v965_v34 = vshll.u32 %v961_v25, 1  ;;  %v1249_v35 = vor.u32 %v1248_v28, %v1247_v27  ;;  %v255_v37 = vshrl.u32 %v254_v32, 31 }
  0xb1   :  { %v256_v38 = vshll.u32 %v252_v31, 1  ;;  %v612_v1 = vsel %vm610_vm14, %v611_v29, %v606_v14  ;;  %v614_v40 = vsel %vm610_vm14, %v613_v30, %v607_v19  ;;  %v1250_v43 = vshll.u32 %v1246_v21, 1 }
  0xb2   :  { %v966_v42 = vor.u32 %v965_v34, %v964_v33  ;;  %v615_v44 = vshrl.u32 %v614_v40, 31  ;;  %v616_v45 = vshll.u32 %v612_v1, 1  ;;  %v2159_v36 = vxor.u32 2147483648, %v1249_v35 }
  0xb3   :  { %v257_v46 = vor.u32 %v256_v38, %v255_v37  ;;  %v967_v47 = vshll.u32 %v963_v26, 1  ;;  %v1254_v39 = vsub.s32 %v1249_v35, %v2386_v10  ;;  %v1256_v49 = vadd.s32 1, %v1250_v43 }
  0xb4   :  { %v2109_v48 = vxor.u32 2147483648, %v966_v42  ;;  %v258_v51 = vshll.u32 %v254_v32, 1  ;;  %v617_v50 = vor.u32 %v616_v45, %v615_v44  ;;  %vm1253_vm0 = vcmp.ge.s32.totalorder %v2159_v36, %v2398_v15 }
  0xb5   :  { %v1983_v52 = vxor.u32 2147483648, %v257_v46  ;;  %v971_v53 = vsub.s32 %v966_v42, %v2386_v10  ;;  %v973_v6 = vadd.s32 1, %v967_v47  ;;  %v618_v54 = vshll.u32 %v614_v40, 1 }
  0xb6   :  { %vm970_vm4 = vcmp.ge.s32.totalorder %v2109_v48, %v2398_v15  ;;  %v1255_v55 = vsel %vm1253_vm0, %v1254_v39, %v1249_v35  ;;  %v1257_v56 = vsel %vm1253_vm0, %v1256_v49, %v1250_v43  ;;  %v262_v57 = vsub.s32 %v257_v46, %v2386_v10 }
  0xb7   :  { %v264_v58 = vadd.s32 1, %v258_v51  ;;  %v2047_v59 = vxor.u32 2147483648, %v617_v50  ;;  %vm261_vm5 = vcmp.ge.s32.totalorder %v1983_v52, %v2398_v15  ;;  %v972_v60 = vsel %vm970_vm4, %v971_v53, %v966_v42 }
  0xb8   :  { %v974_v61 = vsel %vm970_vm4, %v973_v6, %v967_v47  ;;  %v1258_v62 = vshrl.u32 %v1257_v56, 31  ;;  %v1259_v63 = vshll.u32 %v1255_v55, 1  ;;  %v622_v2 = vsub.s32 %v617_v50, %v2386_v10 }
  0xb9   :  { %v624_v3 = vadd.s32 1, %v618_v54  ;;  %v263_v4 = vsel %vm261_vm5, %v262_v57, %v257_v46  ;;  %v265_v5 = vsel %vm261_vm5, %v264_v58, %v258_v51  ;;  %vm621_vm6 = vcmp.ge.s32.totalorder %v2047_v59, %v2398_v15 }
  0xba   :  { %v975_v11 = vshrl.u32 %v974_v61, 31  ;;  %v976_v12 = vshll.u32 %v972_v60, 1  ;;  %v1260_v13 = vor.u32 %v1259_v63, %v1258_v62  ;;  %v266_v14 = vshrl.u32 %v265_v5, 31 }
  0xbb   :  { %v267_v16 = vshll.u32 %v263_v4, 1  ;;  %v623_v17 = vsel %vm621_vm6, %v622_v2, %v617_v50  ;;  %v625_v18 = vsel %vm621_vm6, %v624_v3, %v618_v54  ;;  %v1261_v20 = vshll.u32 %v1257_v56, 1 }
  0xbc   :  { %v977_v19 = vor.u32 %v976_v12, %v975_v11  ;;  %v626_v21 = vshrl.u32 %v625_v18, 31  ;;  %v627_v22 = vshll.u32 %v623_v17, 1  ;;  %v2161_v23 = vxor.u32 2147483648, %v1260_v13 }
  0xbd   :  { %v268_v24 = vor.u32 %v267_v16, %v266_v14  ;;  %v978_v25 = vshll.u32 %v974_v61, 1  ;;  %v1265_v27 = vsub.s32 %v1260_v13, %v2386_v10  ;;  %v1267_v28 = vadd.s32 1, %v1261_v20 }
  0xbe   :  { %v2111_v26 = vxor.u32 2147483648, %v977_v19  ;;  %v269_v29 = vshll.u32 %v265_v5, 1  ;;  %v628_v30 = vor.u32 %v627_v22, %v626_v21  ;;  %vm1264_vm7 = vcmp.ge.s32.totalorder %v2161_v23, %v2398_v15 }
  0xbf   :  { %v1985_v31 = vxor.u32 2147483648, %v268_v24  ;;  %v58_v32 = vand.u32 127, %v46_v0  ;;  %v982_v33 = vsub.s32 %v977_v19, %v2386_v10  ;;  %v984_v34 = vadd.s32 1, %v978_v25 }
  0xc0   :  { %v629_v35 = vshll.u32 %v625_v18, 1  ;;  %vm981_vm8 = vcmp.ge.s32.totalorder %v2111_v26, %v2398_v15  ;;  %v1266_v37 = vsel %vm1264_vm7, %v1265_v27, %v1260_v13  ;;  %v1268_v38 = vsel %vm1264_vm7, %v1267_v28, %v1261_v20 }
  0xc1   :  { %v59_v1 = vstv %s1948_s20  ;;  %v273_v40 = vsub.s32 %v268_v24, %v2386_v10  ;;  %v275_v42 = vadd.s32 1, %v269_v29  ;;  %v2049_v43 = vxor.u32 2147483648, %v628_v30 }
  0xc2   :  { %vm272_vm9 = vcmp.ge.s32.totalorder %v1985_v31, %v2398_v15  ;;  %v983_v44 = vsel %vm981_vm8, %v982_v33, %v977_v19  ;;  %v985_v45 = vsel %vm981_vm8, %v984_v34, %v978_v25  ;;  %v1269_v36 = vshrl.u32 %v1268_v38, 31 }
  0xc3   :  { %v1270_v46 = vshll.u32 %v1266_v37, 1  ;;  %v2564_v0 = vadd.s32 %v59_v1, %v58_v32  ;;  %v635_v47 = vadd.s32 1, %v629_v35  ;;  %v274_v48 = vsel %vm272_vm9, %v273_v40, %v268_v24 }
  0xc4   :  { %v2566_v39 = vsel %vm272_vm9, %v275_v42, %v269_v29  ;;  %vm632_vm10 = vcmp.ge.s32.totalorder %v2049_v43, %v2398_v15  ;;  %v1272_v49 = vshll.u32 %v1268_v38, 1  ;;  %v633_v51 = vsub.s32 %v628_v30, %v2386_v10 }
  0xc5   :  { %v986_v50 = vshrl.u32 %v985_v45, 31  ;;  %v987_v52 = vshll.u32 %v983_v44, 1  ;;  %v1271_v53 = vor.u32 %v1270_v46, %v1269_v36  ;;  %v277_v6 = vshrl.u32 %v2566_v39, 31 }
  0xc6   :  { %v278_v54 = vshll.u32 %v274_v48, 1  ;;  %v2571_v55 = vsel %vm632_vm10, %v635_v47, %v629_v35  ;;  %v1278_v58 = vadd.s32 1, %v1272_v49  ;;  %v1503_v59 = vsub.s32 0, %v2564_v0 }
  0xc7   :  { %v2163_v56 = vxor.u32 2147483648, %v1271_v53  ;;  %v1276_v57 = vsub.s32 %v1271_v53, %v2386_v10  ;;  %v634_v60 = vsel %vm632_vm10, %v633_v51, %v628_v30  ;;  %v988_v61 = vor.u32 %v987_v52, %v986_v50 }
  0xc8   :  { %vm1502_vm11 = vcmp.lt.s32.totalorder %v2564_v0, 0  ;;  %v279_v62 = vor.u32 %v278_v54, %v277_v6  ;;  %v637_v63 = vshrl.u32 %v2571_v55, 31  ;;  %v638_v3 = vshll.u32 %v634_v60, 1 }
  0xc9   :  { %vm1275_vm12 = vcmp.ge.s32.totalorder %v2163_v56, %v2398_v15  ;;  %v989_v4 = vshll.u32 %v985_v45, 1  ;;  %v1504_v11 = vsel %vm1502_vm11, %v1503_v59, %v2564_v0  ;;  %v2113_v12 = vxor.u32 2147483648, %v988_v61 }
  0xca   :  { %v1277_v2 = vsel %vm1275_vm12, %v1276_v57, %v1271_v53  ;;  %v1279_v5 = vsel %vm1275_vm12, %v1278_v58, %v1272_v49  ;;  %v280_v17 = vshll.u32 %v2566_v39, 1  ;;  %v1508_v18 = vshrl.u32 %v1504_v11, 31 }
  0xcb   :  { %v1280_v13 = vshrl.u32 %v1279_v5, 31  ;;  %v1281_v14 = vshll.u32 %v1277_v2, 1  ;;  %v1283_v16 = vshll.u32 %v1279_v5, 1  ;;  %v1511_v19 = vshll.u32 %v1504_v11, 1 }
  0xcc   :  { %v1987_v20 = vxor.u32 2147483648, %v279_v62  ;;  %v639_v21 = vor.u32 %v638_v3, %v637_v63  ;;  %v995_v22 = vadd.s32 1, %v989_v4  ;;  %vm2583_vm13 = vcmp.ge.s32.totalorder %v2113_v12, %v2398_v15 }
  0xcd   :  { %v1282_v23 = vor.u32 %v1281_v14, %v1280_v13  ;;  %v993_v25 = vsub.s32 %v988_v61, %v2386_v10  ;;  %v2205_v26 = vxor.u32 2147483648, %v1508_v18  ;;  %v1515_v27 = vsub.s32 %v1508_v18, %v2386_v10 }
  0xce   :  { %v1289_v30 = vadd.s32 1, %v1283_v16  ;;  %v1517_v31 = vadd.s32 1, %v1511_v19  ;;  %v284_v32 = vsub.s32 %v279_v62, %v2386_v10  ;;  %v286_v33 = vadd.s32 1, %v280_v17 }
  0xcf   :  { %v2165_v28 = vxor.u32 2147483648, %v1282_v23  ;;  %v1287_v29 = vsub.s32 %v1282_v23, %v2386_v10  ;;  %v640_v34 = vshll.u32 %v2571_v55, 1  ;;  %vm1514_vm14 = vcmp.ge.s32.totalorder %v2205_v26, %v2398_v15 }
  0xd0   :  { %vm283_vm0 = vcmp.ge.s32.totalorder %v1987_v20, %v2398_v15  ;;  %v2051_v35 = vxor.u32 2147483648, %v639_v21  ;;  %v1516_v37 = vsel %vm1514_vm14, %v1515_v27, %v1508_v18  ;;  %v644_v38 = vsub.s32 %v639_v21, %v2386_v10 }
  0xd1   :  { %vm1286_vm4 = vcmp.ge.s32.totalorder %v2165_v28, %v2398_v15  ;;  %v994_v1 = vsel %vm2583_vm13, %v993_v25, %v988_v61  ;;  %v2600_v40 = vsel %vm2583_vm13, %v995_v22, %v989_v4  ;;  %v1518_v45 = vsel %vm1514_vm14, %v1517_v31, %v1511_v19 }
  0xd2   :  { %v1288_v42 = vsel %vm1286_vm4, %v1287_v29, %v1282_v23  ;;  %v1290_v43 = vsel %vm1286_vm4, %v1289_v30, %v1283_v16  ;;  %v1520_v36 = vshll.u32 %v1516_v37, 1  ;;  %v285_v46 = vsel %vm283_vm0, %v284_v32, %v279_v62 }
  0xd3   :  { %v1292_v44 = vshll.u32 %v1288_v42, 1  ;;  %v2602_v47 = vsel %vm283_vm0, %v286_v33, %v280_v17  ;;  %v1291_v48 = vshrl.u32 %v1290_v43, 31  ;;  %v1294_v39 = vshll.u32 %v1290_v43, 1 }
  0xd4   :  { %vm643_vm5 = vcmp.ge.s32.totalorder %v2051_v35, %v2398_v15  ;;  %v646_v49 = vadd.s32 1, %v640_v34  ;;  %v1519_v51 = vshrl.u32 %v1518_v45, 31  ;;  %v1522_v50 = vshll.u32 %v1518_v45, 1 }
  0xd5   :  { %v997_v52 = vshrl.u32 %v2600_v40, 31  ;;  %v998_v53 = vshll.u32 %v994_v1, 1  ;;  %v1293_v6 = vor.u32 %v1292_v44, %v1291_v48  ;;  %v288_v54 = vshrl.u32 %v2602_v47, 31 }
  0xd6   :  { %v289_v55 = vshll.u32 %v285_v46, 1  ;;  %v1300_v56 = vadd.s32 1, %v1294_v39  ;;  %v1521_v57 = vor.u32 %v1520_v36, %v1519_v51  ;;  %v645_v58 = vsel %vm643_vm5, %v644_v38, %v639_v21 }
  0xd7   :  { %v2167_v59 = vxor.u32 2147483648, %v1293_v6  ;;  %v1298_v60 = vsub.s32 %v1293_v6, %v2386_v10  ;;  %v2608_v61 = vsel %vm643_vm5, %v646_v49, %v640_v34  ;;  %v1528_v2 = vadd.s32 1, %v1522_v50 }
  0xd8   :  { %v2207_v62 = vxor.u32 2147483648, %v1521_v57  ;;  %v1526_v63 = vsub.s32 %v1521_v57, %v2386_v10  ;;  %v999_v3 = vor.u32 %v998_v53, %v997_v52  ;;  %v290_v4 = vor.u32 %v289_v55, %v288_v54 }
  0xd9   :  { %vm1297_vm6 = vcmp.ge.s32.totalorder %v2167_v59, %v2398_v15  ;;  %v648_v12 = vshrl.u32 %v2608_v61, 31  ;;  %v649_v13 = vshll.u32 %v645_v58, 1  ;;  %v1000_v17 = vshll.u32 %v2600_v40, 1 }
  0xda   :  { %v1299_v5 = vsel %vm1297_vm6, %v1298_v60, %v1293_v6  ;;  %v1301_v11 = vsel %vm1297_vm6, %v1300_v56, %v1294_v39  ;;  %vm1525_vm7 = vcmp.ge.s32.totalorder %v2207_v62, %v2398_v15  ;;  %v2115_v21 = vxor.u32 2147483648, %v999_v3 }
  0xdb   :  { %v1302_v14 = vshrl.u32 %v1301_v11, 31  ;;  %v1303_v16 = vshll.u32 %v1299_v5, 1  ;;  %v1305_v18 = vshll.u32 %v1301_v11, 1  ;;  %v1527_v19 = vsel %vm1525_vm7, %v1526_v63, %v1521_v57 }
  0xdc   :  { %v1529_v20 = vsel %vm1525_vm7, %v1528_v2, %v1522_v50  ;;  %v1531_v25 = vshll.u32 %v1527_v19, 1  ;;  %v291_v27 = vshll.u32 %v2602_v47, 1  ;;  %v1989_v30 = vxor.u32 2147483648, %v290_v4 }
  0xdd   :  { %v1304_v22 = vor.u32 %v1303_v16, %v1302_v14  ;;  %v1530_v23 = vshrl.u32 %v1529_v20, 31  ;;  %v1311_v24 = vadd.s32 1, %v1305_v18  ;;  %v1533_v26 = vshll.u32 %v1529_v20, 1 }
  0xde   :  { %v650_v31 = vor.u32 %v649_v13, %v648_v12  ;;  %v1006_v32 = vadd.s32 1, %v1000_v17  ;;  %vm2618_vm8 = vcmp.ge.s32.totalorder %v2115_v21, %v2398_v15  ;;  %v1004_v35 = vsub.s32 %v999_v3, %v2386_v10 }
  0xdf   :  { %v2169_v28 = vxor.u32 2147483648, %v1304_v22  ;;  %v1309_v29 = vsub.s32 %v1304_v22, %v2386_v10  ;;  %v1532_v33 = vor.u32 %v1531_v25, %v1530_v23  ;;  %v1539_v37 = vadd.s32 1, %v1533_v26 }
  0xe0   :  { %v297_v43 = vadd.s32 1, %v291_v27  ;;  %v651_v44 = vshll.u32 %v2608_v61, 1  ;;  %vm2627_vm10 = vcmp.ge.s32.totalorder %v1989_v30, %v2398_v15  ;;  %v295_v47 = vsub.s32 %v290_v4, %v2386_v10 }
  0xe1   :  { %vm1308_vm9 = vcmp.ge.s32.totalorder %v2169_v28, %v2398_v15  ;;  %v2209_v40 = vxor.u32 2147483648, %v1532_v33  ;;  %v1537_v42 = vsub.s32 %v1532_v33, %v2386_v10  ;;  %v2053_v39 = vxor.u32 2147483648, %v650_v31 }
  0xe2   :  { %v1310_v38 = vsel %vm1308_vm9, %v1309_v29, %v1304_v22  ;;  %v1312_v1 = vsel %vm1308_vm9, %v1311_v24, %v1305_v18  ;;  %v1005_v49 = vsel %vm2618_vm8, %v1004_v35, %v999_v3  ;;  %v2637_v52 = vsel %vm2618_vm8, %v1006_v32, %v1000_v17 }
  0xe3   :  { %v1313_v45 = vshrl.u32 %v1312_v1, 31  ;;  %v1314_v36 = vshll.u32 %v1310_v38, 1  ;;  %v1316_v48 = vshll.u32 %v1312_v1, 1  ;;  %vm1536_vm12 = vcmp.ge.s32.totalorder %v2209_v40, %v2398_v15 }
  0xe4   :  { %v1538_v50 = vsel %vm1536_vm12, %v1537_v42, %v1532_v33  ;;  %v1540_v6 = vsel %vm1536_vm12, %v1539_v37, %v1533_v26  ;;  %v2641_v55 = vsel %vm2627_vm10, %v297_v43, %v291_v27  ;;  %v296_v59 = vsel %vm2627_vm10, %v295_v47, %v290_v4 }
  0xe5   :  { %v1315_v51 = vor.u32 %v1314_v36, %v1313_v45  ;;  %v1322_v53 = vadd.s32 1, %v1316_v48  ;;  %v1542_v54 = vshll.u32 %v1538_v50, 1  ;;  %v1541_v58 = vshrl.u32 %v1540_v6, 31 }
  0xe6   :  { %v657_v60 = vadd.s32 1, %v651_v44  ;;  %v1544_v61 = vshll.u32 %v1540_v6, 1  ;;  %v655_v62 = vsub.s32 %v650_v31, %v2386_v10  ;;  %v1008_v63 = vshrl.u32 %v2637_v52, 31 }
  0xe7   :  { %v2171_v56 = vxor.u32 2147483648, %v1315_v51  ;;  %v1320_v57 = vsub.s32 %v1315_v51, %v2386_v10  ;;  %v1009_v2 = vshll.u32 %v1005_v49, 1  ;;  %v299_v3 = vshrl.u32 %v2641_v55, 31 }
  0xe8   :  { %v1543_v12 = vor.u32 %v1542_v54, %v1541_v58  ;;  %v300_v13 = vshll.u32 %v296_v59, 1  ;;  %vm2651_vm14 = vcmp.ge.s32.totalorder %v2053_v39, %v2398_v15  ;;  %v1550_v20 = vadd.s32 1, %v1544_v61 }
  0xe9   :  { %vm1319_vm13 = vcmp.ge.s32.totalorder %v2171_v56, %v2398_v15  ;;  %v1010_v21 = vor.u32 %v1009_v2, %v1008_v63  ;;  %v656_v24 = vsel %vm2651_vm14, %v655_v62, %v650_v31  ;;  %v2662_v29 = vsel %vm2651_vm14, %v657_v60, %v651_v44 }
  0xea   :  { %v1321_v5 = vsel %vm1319_vm13, %v1320_v57, %v1315_v51  ;;  %v1323_v11 = vsel %vm1319_vm13, %v1322_v53, %v1316_v48  ;;  %v2211_v18 = vxor.u32 2147483648, %v1543_v12  ;;  %v1548_v19 = vsub.s32 %v1543_v12, %v2386_v10 }
  0xeb   :  { %v1324_v4 = vshrl.u32 %v1323_v11, 31  ;;  %v1325_v16 = vshll.u32 %v1321_v5, 1  ;;  %v1327_v17 = vshll.u32 %v1323_v11, 1  ;;  %v301_v28 = vor.u32 %v300_v13, %v299_v3 }
  0xec   :  { %vm1547_vm0 = vcmp.ge.s32.totalorder %v2211_v18, %v2398_v15  ;;  %v1011_v33 = vshll.u32 %v2637_v52, 1  ;;  %v2117_v34 = vxor.u32 2147483648, %v1010_v21  ;;  %v302_v37 = vshll.u32 %v2641_v55, 1 }
  0xed   :  { %v1326_v22 = vor.u32 %v1325_v16, %v1324_v4  ;;  %v1333_v23 = vadd.s32 1, %v1327_v17  ;;  %v1549_v27 = vsel %vm1547_vm0, %v1548_v19, %v1543_v12  ;;  %v1551_v30 = vsel %vm1547_vm0, %v1550_v20, %v1544_v61 }
  0xee   :  { %v1553_v32 = vshll.u32 %v1549_v27, 1  ;;  %v1552_v35 = vshrl.u32 %v1551_v30, 31  ;;  %v1555_v1 = vshll.u32 %v1551_v30, 1  ;;  %v659_v40 = vshrl.u32 %v2662_v29, 31 }
  0xef   :  { %v2173_v25 = vxor.u32 2147483648, %v1326_v22  ;;  %v1331_v26 = vsub.s32 %v1326_v22, %v2386_v10  ;;  %v1991_v44 = vxor.u32 2147483648, %v301_v28  ;;  %v660_v36 = vshll.u32 %v656_v24, 1 }
  0xf0   :  { %v1015_v46 = vsub.s32 %v1010_v21, %v2386_v10  ;;  %v1554_v47 = vor.u32 %v1553_v32, %v1552_v35  ;;  %vm1014_vm5 = vcmp.ge.s32.totalorder %v2117_v34, %v2398_v15  ;;  %v1017_v48 = vadd.s32 1, %v1011_v33 }
  0xf1   :  { %vm1330_vm4 = vcmp.ge.s32.totalorder %v2173_v25, %v2398_v15  ;;  %v1561_v49 = vadd.s32 1, %v1555_v1  ;;  %v306_v53 = vsub.s32 %v301_v28, %v2386_v10  ;;  %v308_v6 = vadd.s32 1, %v302_v37 }
  0xf2   :  { %v1332_v31 = vsel %vm1330_vm4, %v1331_v26, %v1326_v22  ;;  %v1334_v38 = vsel %vm1330_vm4, %v1333_v23, %v1327_v17  ;;  %v2213_v50 = vxor.u32 2147483648, %v1554_v47  ;;  %v1559_v52 = vsub.s32 %v1554_v47, %v2386_v10 }
  0xf3   :  { %v1335_v42 = vshrl.u32 %v1334_v38, 31  ;;  %v1336_v43 = vshll.u32 %v1332_v31, 1  ;;  %v1338_v45 = vshll.u32 %v1334_v38, 1  ;;  %vm2674_vm6 = vcmp.ge.s32.totalorder %v1991_v44, %v2398_v15 }
  0xf4   :  { %v661_v57 = vor.u32 %v660_v36, %v659_v40  ;;  %v1016_v58 = vsel %vm1014_vm5, %v1015_v46, %v1010_v21  ;;  %vm1558_vm7 = vcmp.ge.s32.totalorder %v2213_v50, %v2398_v15  ;;  %v2679_v59 = vsel %vm1014_vm5, %v1017_v48, %v1011_v33 }
  0xf5   :  { %v1337_v39 = vor.u32 %v1336_v43, %v1335_v42  ;;  %v1344_v51 = vadd.s32 1, %v1338_v45  ;;  %v1560_v60 = vsel %vm1558_vm7, %v1559_v52, %v1554_v47  ;;  %v1562_v61 = vsel %vm1558_vm7, %v1561_v49, %v1555_v1 }
  0xf6   :  { %v1563_v2 = vshrl.u32 %v1562_v61, 31  ;;  %v1564_v3 = vshll.u32 %v1560_v60, 1  ;;  %v662_v5 = vshll.u32 %v2662_v29, 1  ;;  %v307_v14 = vsel %vm2674_vm6, %v306_v53, %v301_v28 }
  0xf7   :  { %v2175_v54 = vxor.u32 2147483648, %v1337_v39  ;;  %v1342_v55 = vsub.s32 %v1337_v39, %v2386_v10  ;;  %v2055_v4 = vxor.u32 2147483648, %v661_v57  ;;  %v1566_v17 = vshll.u32 %v1562_v61, 1 }
  0xf8   :  { %v1565_v16 = vor.u32 %v1564_v3, %v1563_v2  ;;  %v2687_v18 = vsel %vm2674_vm6, %v308_v6, %v302_v37  ;;  %v1019_v19 = vshrl.u32 %v2679_v59, 31  ;;  %v1020_v20 = vshll.u32 %v1016_v58, 1 }
  0xf9   :  { %vm1341_vm8 = vcmp.ge.s32.totalorder %v2175_v54, %v2398_v15  ;;  %v1572_v25 = vadd.s32 1, %v1566_v17  ;;  %v666_v26 = vsub.s32 %v661_v57, %v2386_v10  ;;  %v668_v27 = vadd.s32 1, %v662_v5 }
  0xfa   :  { %v1343_v62 = vsel %vm1341_vm8, %v1342_v55, %v1337_v39  ;;  %v1345_v63 = vsel %vm1341_vm8, %v1344_v51, %v1338_v45  ;;  %v2215_v23 = vxor.u32 2147483648, %v1565_v16  ;;  %v1570_v24 = vsub.s32 %v1565_v16, %v2386_v10 }
  0xfb   :  { %v1346_v11 = vshrl.u32 %v1345_v63, 31  ;;  %v1347_v12 = vshll.u32 %v1343_v62, 1  ;;  %v1349_v13 = vshll.u32 %v1345_v63, 1  ;;  %v310_v30 = vshrl.u32 %v2687_v18, 31 }
  0xfc   :  { %v311_v32 = vshll.u32 %v307_v14, 1  ;;  %vm665_vm9 = vcmp.ge.s32.totalorder %v2055_v4, %v2398_v15  ;;  %vm1569_vm10 = vcmp.ge.s32.totalorder %v2215_v23, %v2398_v15  ;;  %v1021_v33 = vor.u32 %v1020_v20, %v1019_v19 }
  0xfd   :  { %v1348_v21 = vor.u32 %v1347_v12, %v1346_v11  ;;  %v1355_v22 = vadd.s32 1, %v1349_v13  ;;  %v1571_v34 = vsel %vm1569_vm10, %v1570_v24, %v1565_v16  ;;  %v1573_v35 = vsel %vm1569_vm10, %v1572_v25, %v1566_v17 }
  0xfe   :  { %v1574_v38 = vshrl.u32 %v1573_v35, 31  ;;  %v1575_v1 = vshll.u32 %v1571_v34, 1  ;;  %v1577_v45 = vshll.u32 %v1573_v35, 1  ;;  %v667_v44 = vsel %vm665_vm9, %v666_v26, %v661_v57 }
  0xff   :  { %v2177_v28 = vxor.u32 2147483648, %v1348_v21  ;;  %v1353_v29 = vsub.s32 %v1348_v21, %v2386_v10  ;;  %v2697_v36 = vsel %vm665_vm9, %v668_v27, %v662_v5  ;;  %v1022_v46 = vshll.u32 %v2679_v59, 1 }
 0x100   :  { %v1576_v47 = vor.u32 %v1575_v1, %v1574_v38  ;;  %v313_v48 = vshll.u32 %v2687_v18, 1  ;;  %v2119_v39 = vxor.u32 2147483648, %v1021_v33  ;;  %v1583_v51 = vadd.s32 1, %v1577_v45 }
 0x101   :  { %vm1352_vm12 = vcmp.ge.s32.totalorder %v2177_v28, %v2398_v15  ;;  %v312_v50 = vor.u32 %v311_v32, %v310_v30  ;;  %v670_v54 = vshrl.u32 %v2697_v36, 31  ;;  %v671_v55 = vshll.u32 %v667_v44, 1 }
 0x102   :  { %v1354_v37 = vsel %vm1352_vm12, %v1353_v29, %v1348_v21  ;;  %v1356_v31 = vsel %vm1352_vm12, %v1355_v22, %v1349_v13  ;;  %v2217_v53 = vxor.u32 2147483648, %v1576_v47  ;;  %v1581_v6 = vsub.s32 %v1576_v47, %v2386_v10 }
 0x103   :  { %v1357_v40 = vshrl.u32 %v1356_v31, 31  ;;  %v1358_v42 = vshll.u32 %v1354_v37, 1  ;;  %v1360_v43 = vshll.u32 %v1356_v31, 1  ;;  %v673_v58 = vshll.u32 %v2697_v36, 1 }
 0x104   :  { %v1026_v59 = vsub.s32 %v1021_v33, %v2386_v10  ;;  %v1028_v60 = vadd.s32 1, %v1022_v46  ;;  %vm1580_vm13 = vcmp.ge.s32.totalorder %v2217_v53, %v2398_v15  ;;  %vm2708_vm14 = vcmp.ge.s32.totalorder %v2119_v39, %v2398_v15 }
 0x105   :  { %v1359_v49 = vor.u32 %v1358_v42, %v1357_v40  ;;  %v1366_v52 = vadd.s32 1, %v1360_v43  ;;  %v1582_v62 = vsel %vm1580_vm13, %v1581_v6, %v1576_v47  ;;  %v1584_v63 = vsel %vm1580_vm13, %v1583_v51, %v1577_v45 }
 0x106   :  { %v1585_v5 = vshrl.u32 %v1584_v63, 31  ;;  %v1586_v11 = vshll.u32 %v1582_v62, 1  ;;  %v1588_v4 = vshll.u32 %v1584_v63, 1  ;;  %v1993_v16 = vxor.u32 2147483648, %v312_v50 }
 0x107   :  { %v2179_v56 = vxor.u32 2147483648, %v1359_v49  ;;  %v1364_v57 = vsub.s32 %v1359_v49, %v2386_v10  ;;  %v672_v17 = vor.u32 %v671_v55, %v670_v54  ;;  %v319_v19 = vadd.s32 1, %v313_v48 }
 0x108   :  { %v1587_v18 = vor.u32 %v1586_v11, %v1585_v5  ;;  %v2715_v20 = vsel %vm2708_vm14, %v1028_v60, %v1022_v46  ;;  %v1594_v22 = vadd.s32 1, %v1588_v4  ;;  %v1027_v23 = vsel %vm2708_vm14, %v1026_v59, %v1021_v33 }
 0x109   :  { %vm1363_vm0 = vcmp.ge.s32.totalorder %v2179_v56, %v2398_v15  ;;  %v317_v27 = vsub.s32 %v312_v50, %v2386_v10  ;;  %v679_v28 = vadd.s32 1, %v673_v58  ;;  %vm2725_vm4 = vcmp.ge.s32.totalorder %v1993_v16, %v2398_v15 }
 0x10a   :  { %v1365_v2 = vsel %vm1363_vm0, %v1364_v57, %v1359_v49  ;;  %v1367_v3 = vsel %vm1363_vm0, %v1366_v52, %v1360_v43  ;;  %v2219_v25 = vxor.u32 2147483648, %v1587_v18  ;;  %v1592_v26 = vsub.s32 %v1587_v18, %v2386_v10 }
 0x10b   :  { %v1368_v12 = vshrl.u32 %v1367_v3, 31  ;;  %v1369_v13 = vshll.u32 %v1365_v2, 1  ;;  %v1371_v14 = vshll.u32 %v1367_v3, 1  ;;  %v2057_v34 = vxor.u32 2147483648, %v672_v17 }
 0x10c   :  { %v1030_v33 = vshrl.u32 %v2715_v20, 31  ;;  %vm1591_vm5 = vcmp.ge.s32.totalorder %v2219_v25, %v2398_v15  ;;  %v1031_v35 = vshll.u32 %v1027_v23, 1  ;;  %v318_v47 = vsel %vm2725_vm4, %v317_v27, %v312_v50 }
 0x10d   :  { %v1370_v21 = vor.u32 %v1369_v13, %v1368_v12  ;;  %v1377_v24 = vadd.s32 1, %v1371_v14  ;;  %v1593_v37 = vsel %vm1591_vm5, %v1592_v26, %v1587_v18  ;;  %v1595_v31 = vsel %vm1591_vm5, %v1594_v22, %v1588_v4 }
 0x10e   :  { %v1596_v40 = vshrl.u32 %v1595_v31, 31  ;;  %v1597_v42 = vshll.u32 %v1593_v37, 1  ;;  %v1599_v46 = vshll.u32 %v1595_v31, 1  ;;  %v2736_v39 = vsel %vm2725_vm4, %v319_v19, %v313_v48 }
 0x10f   :  { %v2181_v29 = vxor.u32 2147483648, %v1370_v21  ;;  %v1375_v30 = vsub.s32 %v1370_v21, %v2386_v10  ;;  %v677_v49 = vsub.s32 %v672_v17, %v2386_v10  ;;  %vm676_vm7 = vcmp.ge.s32.totalorder %v2057_v34, %v2398_v15 }
 0x110   :  { %v1598_v51 = vor.u32 %v1597_v42, %v1596_v40  ;;  %v1032_v52 = vor.u32 %v1031_v35, %v1030_v33  ;;  %v1605_v6 = vadd.s32 1, %v1599_v46  ;;  %v321_v57 = vshrl.u32 %v2736_v39, 31 }
 0x111   :  { %vm1374_vm6 = vcmp.ge.s32.totalorder %v2181_v29, %v2398_v15  ;;  %v322_v59 = vshll.u32 %v318_v47, 1  ;;  %v678_v48 = vsel %vm676_vm7, %v677_v49, %v672_v17  ;;  %v2745_v61 = vsel %vm676_vm7, %v679_v28, %v673_v58 }
 0x112   :  { %v1376_v38 = vsel %vm1374_vm6, %v1375_v30, %v1370_v21  ;;  %v1378_v1 = vsel %vm1374_vm6, %v1377_v24, %v1371_v14  ;;  %v2221_v55 = vxor.u32 2147483648, %v1598_v51  ;;  %v1603_v56 = vsub.s32 %v1598_v51, %v2386_v10 }
 0x113   :  { %v1379_v43 = vshrl.u32 %v1378_v1, 31  ;;  %v1380_v45 = vshll.u32 %v1376_v38, 1  ;;  %v1382_v44 = vshll.u32 %v1378_v1, 1  ;;  %v1033_v62 = vshll.u32 %v2715_v20, 1 }
 0x114   :  { %vm1602_vm8 = vcmp.ge.s32.totalorder %v2221_v55, %v2398_v15  ;;  %v2121_v63 = vxor.u32 2147483648, %v1032_v52  ;;  %v323_v17 = vor.u32 %v322_v59, %v321_v57  ;;  %v681_v36 = vshrl.u32 %v2745_v61, 31 }
 0x115   :  { %v1381_v53 = vor.u32 %v1380_v45, %v1379_v43  ;;  %v1388_v54 = vadd.s32 1, %v1382_v44  ;;  %v1604_v2 = vsel %vm1602_vm8, %v1603_v56, %v1598_v51  ;;  %v1606_v3 = vsel %vm1602_vm8, %v1605_v6, %v1599_v46 }
 0x116   :  { %v1607_v12 = vshrl.u32 %v1606_v3, 31  ;;  %v1608_v13 = vshll.u32 %v1604_v2, 1  ;;  %v1610_v16 = vshll.u32 %v1606_v3, 1  ;;  %v682_v58 = vshll.u32 %v678_v48, 1 }
 0x117   :  { %v2183_v50 = vxor.u32 2147483648, %v1381_v53  ;;  %v1386_v60 = vsub.s32 %v1381_v53, %v2386_v10  ;;  %v1037_v19 = vsub.s32 %v1032_v52, %v2386_v10  ;;  %v1039_v20 = vadd.s32 1, %v1033_v62 }
 0x118   :  { %v1609_v18 = vor.u32 %v1608_v13, %v1607_v12  ;;  %v1616_v22 = vadd.s32 1, %v1610_v16  ;;  %vm1036_vm10 = vcmp.ge.s32.totalorder %v2121_v63, %v2398_v15  ;;  %v324_v26 = vshll.u32 %v2736_v39, 1 }
 0x119   :  { %vm1385_vm9 = vcmp.ge.s32.totalorder %v2183_v50, %v2398_v15  ;;  %v1995_v28 = vxor.u32 2147483648, %v323_v17  ;;  %v683_v29 = vor.u32 %v682_v58, %v681_v36  ;;  %v1038_v30 = vsel %vm1036_vm10, %v1037_v19, %v1032_v52 }
 0x11a   :  { %v1387_v5 = vsel %vm1385_vm9, %v1386_v60, %v1381_v53  ;;  %v1389_v11 = vsel %vm1385_vm9, %v1388_v54, %v1382_v44  ;;  %v2223_v24 = vxor.u32 2147483648, %v1609_v18  ;;  %v1614_v25 = vsub.s32 %v1609_v18, %v2386_v10 }
 0x11b   :  { %v1390_v14 = vshrl.u32 %v1389_v11, 31  ;;  %v1391_v4 = vshll.u32 %v1387_v5, 1  ;;  %v1393_v23 = vshll.u32 %v1389_v11, 1  ;;  %v2756_v32 = vsel %vm1036_vm10, %v1039_v20, %v1033_v62 }
 0x11c   :  { %vm1613_vm12 = vcmp.ge.s32.totalorder %v2223_v24, %v2398_v15  ;;  %v330_v1 = vadd.s32 1, %v324_v26  ;;  %v684_v40 = vshll.u32 %v2745_v61, 1  ;;  %v328_v43 = vsub.s32 %v323_v17, %v2386_v10 }
 0x11d   :  { %v1392_v21 = vor.u32 %v1391_v4, %v1390_v14  ;;  %v1615_v34 = vsel %vm1613_vm12, %v1614_v25, %v1609_v18  ;;  %v1617_v33 = vsel %vm1613_vm12, %v1616_v22, %v1610_v16  ;;  %v1399_v37 = vadd.s32 1, %v1393_v23 }
 0x11e   :  { %v1618_v31 = vshrl.u32 %v1617_v33, 31  ;;  %v1619_v38 = vshll.u32 %v1615_v34, 1  ;;  %v1621_v42 = vshll.u32 %v1617_v33, 1  ;;  %v1041_v45 = vshrl.u32 %v2756_v32, 31 }
 0x11f   :  { %v2185_v27 = vxor.u32 2147483648, %v1392_v21  ;;  %v1397_v35 = vsub.s32 %v1392_v21, %v2386_v10  ;;  %v1042_v44 = vshll.u32 %v1038_v30, 1  ;;  %vm327_vm14 = vcmp.ge.s32.totalorder %v1995_v28, %v2398_v15 }
 0x120   :  { %v1620_v46 = vor.u32 %v1619_v38, %v1618_v31  ;;  %v2059_v47 = vxor.u32 2147483648, %v683_v29  ;;  %v1627_v39 = vadd.s32 1, %v1621_v42  ;;  %v690_v6 = vadd.s32 1, %v684_v40 }
 0x121   :  { %vm1396_vm13 = vcmp.ge.s32.totalorder %v2185_v27, %v2398_v15  ;;  %v329_v54 = vsel %vm327_vm14, %v328_v43, %v323_v17  ;;  %v2765_v55 = vsel %vm327_vm14, %v330_v1, %v324_v26  ;;  %v1043_v56 = vor.u32 %v1042_v44, %v1041_v45 }
 0x122   :  { %v1398_v49 = vsel %vm1396_vm13, %v1397_v35, %v1392_v21  ;;  %v1400_v51 = vsel %vm1396_vm13, %v1399_v37, %v1393_v23  ;;  %v2225_v52 = vxor.u32 2147483648, %v1620_v46  ;;  %v1625_v53 = vsub.s32 %v1620_v46, %v2386_v10 }
 0x123   :  { %v1401_v57 = vshrl.u32 %v1400_v51, 31  ;;  %v1402_v59 = vshll.u32 %v1398_v49, 1  ;;  %vm687_vm4 = vcmp.ge.s32.totalorder %v2059_v47, %v2398_v15  ;;  %v688_v48 = vsub.s32 %v683_v29, %v2386_v10 }
 0x124   :  { %vm1624_vm0 = vcmp.ge.s32.totalorder %v2225_v52, %v2398_v15  ;;  %v332_v63 = vshrl.u32 %v2765_v55, 31  ;;  %v333_v2 = vshll.u32 %v329_v54, 1  ;;  %v1044_v3 = vshll.u32 %v2756_v32, 1 }
 0x125   :  { %v1626_v50 = vsel %vm1624_vm0, %v1625_v53, %v1620_v46  ;;  %v1628_v60 = vsel %vm1624_vm0, %v1627_v39, %v1621_v42  ;;  %v2123_v11 = vxor.u32 2147483648, %v1043_v56  ;;  %v2772_v13 = vsel %vm687_vm4, %v690_v6, %v684_v40 }
 0x126   :  { %v1629_v61 = vshrl.u32 %v1628_v60, 31  ;;  %v1630_v62 = vshll.u32 %v1626_v50, 1  ;;  %v1632_v5 = vshll.u32 %v1628_v60, 1  ;;  %v1403_v14 = vor.u32 %v1402_v59, %v1401_v57 }
 0x127   :  { %v689_v16 = vsel %vm687_vm4, %v688_v48, %v683_v29  ;;  %v334_v58 = vor.u32 %v333_v2, %v332_v63  ;;  %v1048_v18 = vsub.s32 %v1043_v56, %v2386_v10  ;;  %v1050_v19 = vadd.s32 1, %v1044_v3 }
 0x128   :  { %v1631_v12 = vor.u32 %v1630_v62, %v1629_v61  ;;  %v1638_v4 = vadd.s32 1, %v1632_v5  ;;  %v692_v20 = vshrl.u32 %v2772_v13, 31  ;;  %vm1047_vm5 = vcmp.ge.s32.totalorder %v2123_v11, %v2398_v15 }
 0x129   :  { %v1404_v21 = vshll.u32 %v1400_v51, 1  ;;  %v693_v22 = vshll.u32 %v689_v16, 1  ;;  %v2187_v23 = vxor.u32 2147483648, %v1403_v14  ;;  %v335_v28 = vshll.u32 %v2765_v55, 1 }
 0x12a   :  { %v2227_v17 = vxor.u32 2147483648, %v1631_v12  ;;  %v1636_v36 = vsub.s32 %v1631_v12, %v2386_v10  ;;  %v1049_v29 = vsel %vm1047_vm5, %v1048_v18, %v1043_v56  ;;  %v2780_v30 = vsel %vm1047_vm5, %v1050_v19, %v1044_v3 }
 0x12b   :  { %v1408_v34 = vsub.s32 %v1403_v14, %v2386_v10  ;;  %v1410_v33 = vadd.s32 1, %v1404_v21  ;;  %v1997_v37 = vxor.u32 2147483648, %v334_v58  ;;  %v694_v31 = vor.u32 %v693_v22, %v692_v20 }
 0x12c   :  { %vm1635_vm6 = vcmp.ge.s32.totalorder %v2227_v17, %v2398_v15  ;;  %vm1407_vm7 = vcmp.ge.s32.totalorder %v2187_v23, %v2398_v15  ;;  %v1052_v1 = vshrl.u32 %v2780_v30, 31  ;;  %v1053_v40 = vshll.u32 %v1049_v29, 1 }
 0x12d   :  { %v1637_v24 = vsel %vm1635_vm6, %v1636_v36, %v1631_v12  ;;  %v1639_v25 = vsel %vm1635_vm6, %v1638_v4, %v1632_v5  ;;  %v341_v45 = vadd.s32 1, %v335_v28  ;;  %v695_v44 = vshll.u32 %v2772_v13, 1 }
 0x12e   :  { %v1640_v26 = vshrl.u32 %v1639_v25, 31  ;;  %v1641_v27 = vshll.u32 %v1637_v24, 1  ;;  %v1643_v32 = vshll.u32 %v1639_v25, 1  ;;  %v339_v46 = vsub.s32 %v334_v58, %v2386_v10 }
 0x12f   :  { %v1409_v47 = vsel %vm1407_vm7, %v1408_v34, %v1403_v14  ;;  %v1411_v39 = vsel %vm1407_vm7, %v1410_v33, %v1404_v21  ;;  %vm338_vm9 = vcmp.ge.s32.totalorder %v1997_v37, %v2398_v15  ;;  %v2061_v49 = vxor.u32 2147483648, %v694_v31 }
 0x130   :  { %v1642_v35 = vor.u32 %v1641_v27, %v1640_v26  ;;  %v1649_v38 = vadd.s32 1, %v1643_v32  ;;  %v1054_v53 = vor.u32 %v1053_v40, %v1052_v1  ;;  %v1412_v55 = vshrl.u32 %v1411_v39, 31 }
 0x131   :  { %v1413_v56 = vshll.u32 %v1409_v47, 1  ;;  %v2790_v59 = vsel %vm338_vm9, %v341_v45, %v335_v28  ;;  %v699_v50 = vsub.s32 %v694_v31, %v2386_v10  ;;  %v701_v60 = vadd.s32 1, %v695_v44 }
 0x132   :  { %v2229_v42 = vxor.u32 2147483648, %v1642_v35  ;;  %v1647_v43 = vsub.s32 %v1642_v35, %v2386_v10  ;;  %v340_v61 = vsel %vm338_vm9, %v339_v46, %v334_v58  ;;  %vm698_vm10 = vcmp.ge.s32.totalorder %v2061_v49, %v2398_v15 }
 0x133   :  { %v1055_v62 = vshll.u32 %v2780_v30, 1  ;;  %v2125_v2 = vxor.u32 2147483648, %v1054_v53  ;;  %v343_v11 = vshrl.u32 %v2790_v59, 31  ;;  %v1414_v12 = vor.u32 %v1413_v56, %v1412_v55 }
 0x134   :  { %vm1646_vm8 = vcmp.ge.s32.totalorder %v2229_v42, %v2398_v15  ;;  %v344_v13 = vshll.u32 %v340_v61, 1  ;;  %v700_v14 = vsel %vm698_vm10, %v699_v50, %v694_v31  ;;  %v2797_v4 = vsel %vm698_vm10, %v701_v60, %v695_v44 }
 0x135   :  { %v1648_v51 = vsel %vm1646_vm8, %v1647_v43, %v1642_v35  ;;  %v1650_v52 = vsel %vm1646_vm8, %v1649_v38, %v1643_v32  ;;  %v1059_v16 = vsub.s32 %v1054_v53, %v2386_v10  ;;  %v1061_v17 = vadd.s32 1, %v1055_v62 }
 0x136   :  { %v1651_v6 = vshrl.u32 %v1650_v52, 31  ;;  %v1652_v54 = vshll.u32 %v1648_v51, 1  ;;  %v1654_v57 = vshll.u32 %v1650_v52, 1  ;;  %vm1058_vm13 = vcmp.ge.s32.totalorder %v2125_v2, %v2398_v15 }
 0x137   :  { %v1415_v18 = vshll.u32 %v1411_v39, 1  ;;  %v2189_v21 = vxor.u32 2147483648, %v1414_v12  ;;  %v345_v23 = vor.u32 %v344_v13, %v343_v11  ;;  %v703_v24 = vshrl.u32 %v2797_v4, 31 }
 0x138   :  { %v1653_v48 = vor.u32 %v1652_v54, %v1651_v6  ;;  %v1660_v63 = vadd.s32 1, %v1654_v57  ;;  %v704_v26 = vshll.u32 %v700_v14, 1  ;;  %v1060_v27 = vsel %vm1058_vm13, %v1059_v16, %v1054_v53 }
 0x139   :  { %v2803_v28 = vsel %vm1058_vm13, %v1061_v17, %v1055_v62  ;;  %v1419_v30 = vsub.s32 %v1414_v12, %v2386_v10  ;;  %v1421_v32 = vadd.s32 1, %v1415_v18  ;;  %v346_v35 = vshll.u32 %v2790_v59, 1 }
 0x13a   :  { %v2231_v3 = vxor.u32 2147483648, %v1653_v48  ;;  %v1658_v5 = vsub.s32 %v1653_v48, %v2386_v10  ;;  %vm1418_vm14 = vcmp.ge.s32.totalorder %v2189_v21, %v2398_v15  ;;  %v1999_v37 = vxor.u32 2147483648, %v345_v23 }
 0x13b   :  { %v1063_v31 = vshrl.u32 %v2803_v28, 31  ;;  %v1064_v38 = vshll.u32 %v1060_v27, 1  ;;  %v705_v1 = vor.u32 %v704_v26, %v703_v24  ;;  %v1420_v43 = vsel %vm1418_vm14, %v1419_v30, %v1414_v12 }
 0x13c   :  { %vm1657_vm12 = vcmp.ge.s32.totalorder %v2231_v3, %v2398_v15  ;;  %v2811_v45 = vsel %vm1418_vm14, %v1421_v32, %v1415_v18  ;;  %v352_v47 = vadd.s32 1, %v346_v35  ;;  %v706_v39 = vshll.u32 %v2797_v4, 1 }
 0x13d   :  { %v1659_v36 = vsel %vm1657_vm12, %v1658_v5, %v1653_v48  ;;  %v1661_v58 = vsel %vm1657_vm12, %v1660_v63, %v1654_v57  ;;  %vm349_vm4 = vcmp.ge.s32.totalorder %v1999_v37, %v2398_v15  ;;  %v350_v51 = vsub.s32 %v345_v23, %v2386_v10 }
 0x13e   :  { %v1662_v19 = vshrl.u32 %v1661_v58, 31  ;;  %v1663_v20 = vshll.u32 %v1659_v36, 1  ;;  %v1665_v22 = vshll.u32 %v1661_v58, 1  ;;  %v1065_v52 = vor.u32 %v1064_v38, %v1063_v31 }
 0x13f   :  { %v1423_v6 = vshrl.u32 %v2811_v45, 31  ;;  %v1424_v54 = vshll.u32 %v1420_v43, 1  ;;  %v2063_v56 = vxor.u32 2147483648, %v705_v1  ;;  %v2818_v50 = vsel %vm349_vm4, %v352_v47, %v346_v35 }
 0x140   :  { %v1664_v25 = vor.u32 %v1663_v20, %v1662_v19  ;;  %v1671_v29 = vadd.s32 1, %v1665_v22  ;;  %v1066_v60 = vshll.u32 %v2803_v28, 1  ;;  %v351_v48 = vsel %vm349_vm4, %v350_v51, %v345_v23 }
 0x141   :  { %v712_v61 = vadd.s32 1, %v706_v39  ;;  %v2127_v62 = vxor.u32 2147483648, %v1065_v52  ;;  %v710_v63 = vsub.s32 %v705_v1, %v2386_v10  ;;  %v1425_v2 = vor.u32 %v1424_v54, %v1423_v6 }
 0x142   :  { %v2233_v34 = vxor.u32 2147483648, %v1664_v25  ;;  %v1669_v33 = vsub.s32 %v1664_v25, %v2386_v10  ;;  %v354_v11 = vshrl.u32 %v2818_v50, 31  ;;  %vm709_vm6 = vcmp.ge.s32.totalorder %v2063_v56, %v2398_v15 }
 0x143   :  { %v355_v14 = vshll.u32 %v351_v48, 1  ;;  %v1070_v4 = vsub.s32 %v1065_v52, %v2386_v10  ;;  %v1072_v16 = vadd.s32 1, %v1066_v60  ;;  %vm1069_vm7 = vcmp.ge.s32.totalorder %v2127_v62, %v2398_v15 }
 0x144   :  { %vm1668_vm0 = vcmp.ge.s32.totalorder %v2233_v34, %v2398_v15  ;;  %v1426_v36 = vshll.u32 %v2811_v45, 1  ;;  %v2828_v18 = vsel %vm709_vm6, %v712_v61, %v706_v39  ;;  %v2191_v19 = vxor.u32 2147483648, %v1425_v2 }
 0x145   :  { %v1670_v40 = vsel %vm1668_vm0, %v1669_v33, %v1664_v25  ;;  %v1672_v42 = vsel %vm1668_vm0, %v1671_v29, %v1665_v22  ;;  %v711_v21 = vsel %vm709_vm6, %v710_v63, %v705_v1  ;;  %v356_v24 = vor.u32 %v355_v14, %v354_v11 }
 0x146   :  { %v1673_v44 = vshrl.u32 %v1672_v42, 31  ;;  %v1674_v46 = vshll.u32 %v1670_v40, 1  ;;  %v1676_v49 = vshll.u32 %v1672_v42, 1  ;;  %v1071_v25 = vsel %vm1069_vm7, %v1070_v4, %v1065_v52 }
 0x147   :  { %v1073_v26 = vsel %vm1069_vm7, %v1072_v16, %v1066_v60  ;;  %v714_v27 = vshrl.u32 %v2828_v18, 31  ;;  %v1430_v28 = vsub.s32 %v1425_v2, %v2386_v10  ;;  %v1432_v29 = vadd.s32 1, %v1426_v36 }
 0x148   :  { %v1675_v53 = vor.u32 %v1674_v46, %v1673_v44  ;;  %v1682_v55 = vadd.s32 1, %v1676_v49  ;;  %v715_v30 = vshll.u32 %v711_v21, 1  ;;  %vm1429_vm9 = vcmp.ge.s32.totalorder %v2191_v19, %v2398_v15 }
 0x149   :  { %v1074_v33 = vshrl.u32 %v1073_v26, 31  ;;  %v1075_v35 = vshll.u32 %v1071_v25, 1  ;;  %v357_v38 = vshll.u32 %v2818_v50, 1  ;;  %v2001_v40 = vxor.u32 2147483648, %v356_v24 }
 0x14a   :  { %v2235_v57 = vxor.u32 2147483648, %v1675_v53  ;;  %v1680_v59 = vsub.s32 %v1675_v53, %v2386_v10  ;;  %v1431_v42 = vsel %vm1429_vm9, %v1430_v28, %v1425_v2  ;;  %v1433_v43 = vsel %vm1429_vm9, %v1432_v29, %v1426_v36 }
 0x14b   :  { %v716_v44 = vor.u32 %v715_v30, %v714_v27  ;;  %v1076_v47 = vor.u32 %v1075_v35, %v1074_v33  ;;  %v717_v51 = vshll.u32 %v2828_v18, 1  ;;  %v1434_v52 = vshrl.u32 %v1433_v43, 31 }
 0x14c   :  { %vm1679_vm5 = vcmp.ge.s32.totalorder %v2235_v57, %v2398_v15  ;;  %vm360_vm10 = vcmp.ge.s32.totalorder %v2001_v40, %v2398_v15  ;;  %v361_v6 = vsub.s32 %v356_v24, %v2386_v10  ;;  %v363_v54 = vadd.s32 1, %v357_v38 }
 0x14d   :  { %v1681_v3 = vsel %vm1679_vm5, %v1680_v59, %v1675_v53  ;;  %v1683_v5 = vsel %vm1679_vm5, %v1682_v55, %v1676_v49  ;;  %v1435_v53 = vshll.u32 %v1431_v42, 1  ;;  %v2065_v55 = vxor.u32 2147483648, %v716_v44 }
 0x14e   :  { %v1684_v12 = vshrl.u32 %v1683_v5, 31  ;;  %v1685_v13 = vshll.u32 %v1681_v3, 1  ;;  %v1687_v17 = vshll.u32 %v1683_v5, 1  ;;  %v1077_v56 = vshll.u32 %v1073_v26, 1 }
 0x14f   :  { %v2129_v50 = vxor.u32 2147483648, %v1076_v47  ;;  %v723_v61 = vadd.s32 1, %v717_v51  ;;  %v1436_v62 = vor.u32 %v1435_v53, %v1434_v52  ;;  %v362_v2 = vsel %vm360_vm10, %v361_v6, %v356_v24 }
 0x150   :  { %v1686_v58 = vor.u32 %v1685_v13, %v1684_v12  ;;  %v1693_v20 = vadd.s32 1, %v1687_v17  ;;  %v2841_v3 = vsel %vm360_vm10, %v363_v54, %v357_v38  ;;  %v721_v5 = vsub.s32 %v716_v44, %v2386_v10 }
 0x151   :  { %vm720_vm13 = vcmp.ge.s32.totalorder %v2065_v55, %v2398_v15  ;;  %v1081_v12 = vsub.s32 %v1076_v47, %v2386_v10  ;;  %v1083_v13 = vadd.s32 1, %v1077_v56  ;;  %vm1080_vm14 = vcmp.ge.s32.totalorder %v2129_v50, %v2398_v15 }
 0x152   :  { %v2237_v22 = vxor.u32 2147483648, %v1686_v58  ;;  %v1691_v23 = vsub.s32 %v1686_v58, %v2386_v10  ;;  %v1437_v4 = vshll.u32 %v1433_v43, 1  ;;  %v365_v36 = vshrl.u32 %v2841_v3, 31 }
 0x153   :  { %v366_v18 = vshll.u32 %v362_v2, 1  ;;  %v722_v19 = vsel %vm720_vm13, %v721_v5, %v716_v44  ;;  %v1082_v21 = vsel %vm1080_vm14, %v1081_v12, %v1076_v47  ;;  %v1441_v29 = vsub.s32 %v1436_v62, %v2386_v10 }
 0x154   :  { %vm1690_vm8 = vcmp.ge.s32.totalorder %v2237_v22, %v2398_v15  ;;  %v2852_v22 = vsel %vm1080_vm14, %v1083_v13, %v1077_v56  ;;  %v1443_v25 = vadd.s32 1, %v1437_v4  ;;  %v368_v42 = vshll.u32 %v2841_v3, 1 }
 0x155   :  { %v1692_v32 = vsel %vm1690_vm8, %v1691_v23, %v1686_v58  ;;  %v1694_v34 = vsel %vm1690_vm8, %v1693_v20, %v1687_v17  ;;  %v2193_v58 = vxor.u32 2147483648, %v1436_v62  ;;  %v2849_v20 = vsel %vm720_vm13, %v723_v61, %v717_v51 }
 0x156   :  { %v1695_v37 = vshrl.u32 %v1694_v34, 31  ;;  %v1696_v31 = vshll.u32 %v1692_v32, 1  ;;  %v1698_v1 = vshll.u32 %v1694_v34, 1  ;;  %v367_v30 = vor.u32 %v366_v18, %v365_v36 }
 0x157   :  { %vm1440_vm4 = vcmp.ge.s32.totalorder %v2193_v58, %v2398_v15  ;;  %v725_v32 = vshrl.u32 %v2849_v20, 31  ;;  %v726_v34 = vshll.u32 %v722_v19, 1  ;;  %v1085_v35 = vshrl.u32 %v2852_v22, 31 }
 0x158   :  { %v1697_v45 = vor.u32 %v1696_v31, %v1695_v37  ;;  %v1704_v46 = vadd.s32 1, %v1698_v1  ;;  %v1086_v37 = vshll.u32 %v1082_v21, 1  ;;  %v2858_v38 = vsel %vm1440_vm4, %v1443_v25, %v1437_v4 }
 0x159   :  { %v1442_v43 = vsel %vm1440_vm4, %v1441_v29, %v1436_v62  ;;  %v727_v44 = vor.u32 %v726_v34, %v725_v32  ;;  %v1445_v47 = vshrl.u32 %v2858_v38, 31  ;;  %v372_v54 = vsub.s32 %v367_v30, %v2386_v10 }
 0x15a   :  { %v2239_v39 = vxor.u32 2147483648, %v1697_v45  ;;  %v1702_v49 = vsub.s32 %v1697_v45, %v2386_v10  ;;  %v1446_v51 = vshll.u32 %v1442_v43, 1  ;;  %v374_v55 = vadd.s32 1, %v368_v42 }
 0x15b   :  { %v728_v56 = vshll.u32 %v2849_v20, 1  ;;  %v732_v5 = vsub.s32 %v727_v44, %v2386_v10 }
 0x15c   :  { %vm1701_vm12 = vcmp.ge.s32.totalorder %v2239_v39, %v2398_v15  ;;  %v1447_v61 = vor.u32 %v1446_v51, %v1445_v47 }
 0x15d   :  { %v1703_v57 = vsel %vm1701_vm12, %v1702_v49, %v1697_v45  ;;  %v1705_v59 = vsel %vm1701_vm12, %v1704_v46, %v1698_v1  ;;  %v2003_v45 = vxor.u32 2147483648, %v367_v30  ;;  %v1087_v46 = vor.u32 %v1086_v37, %v1085_v35 }
 0x15e   :  { %v1706_v60 = vshrl.u32 %v1705_v59, 31  ;;  %v1707_v48 = vshll.u32 %v1703_v57, 1  ;;  %v1709_v63 = vshll.u32 %v1705_v59, 1  ;;  %v2067_v57 = vxor.u32 2147483648, %v727_v44 }
 0x15f   :  { %vm371_vm6 = vcmp.ge.s32.totalorder %v2003_v45, %v2398_v15  ;;  %v1088_v59 = vshll.u32 %v2852_v22, 1  ;;  %v1092_v12 = vsub.s32 %v1087_v46, %v2386_v10 }
 0x160   :  { %v1708_v11 = vor.u32 %v1707_v48, %v1706_v60  ;;  %v1715_v14 = vadd.s32 1, %v1709_v63  ;;  %v2131_v60 = vxor.u32 2147483648, %v1087_v46  ;;  %v373_v2 = vsel %vm371_vm6, %v372_v54, %v367_v30 }
 0x161   :  { %v2869_v3 = vsel %vm371_vm6, %v374_v55, %v368_v42  ;;  %vm731_vm7 = vcmp.ge.s32.totalorder %v2067_v57, %v2398_v15  ;;  %v1094_v13 = vadd.s32 1, %v1088_v59  ;;  %v377_v20 = vshll.u32 %v373_v2, 1 }
 0x162   :  { %v2241_v16 = vxor.u32 2147483648, %v1708_v11  ;;  %v1713_v17 = vsub.s32 %v1708_v11, %v2386_v10  ;;  %vm1091_vm9 = vcmp.ge.s32.totalorder %v2131_v60, %v2398_v15  ;;  %v376_v19 = vshrl.u32 %v2869_v3, 31 }
 0x163   :  { %v733_v21 = vsel %vm731_vm7, %v732_v5, %v727_v44  ;;  %v2880_v25 = vsel %vm1091_vm9, %v1094_v13, %v1088_v59  ;;  %v379_v44 = vshll.u32 %v2869_v3, 1 }
 0x164   :  { %vm1712_vm0 = vcmp.ge.s32.totalorder %v2241_v16, %v2398_v15  ;;  %v378_v32 = vor.u32 %v377_v20, %v376_v19  ;;  %v1096_v35 = vshrl.u32 %v2880_v25, 31 }
 0x165   :  { %v1714_v23 = vsel %vm1712_vm0, %v1713_v17, %v1708_v11  ;;  %v1716_v24 = vsel %vm1712_vm0, %v1715_v14, %v1709_v63  ;;  %v734_v11 = vadd.s32 1, %v728_v56  ;;  %v1448_v14 = vshll.u32 %v2858_v38, 1 }
 0x166   :  { %v1717_v26 = vshrl.u32 %v1716_v24, 31  ;;  %v1718_v27 = vshll.u32 %v1714_v23, 1  ;;  %v1720_v28 = vshll.u32 %v1716_v24, 1  ;;  %v2195_v17 = vxor.u32 2147483648, %v1447_v61 }
 0x167   :  { %v2878_v22 = vsel %vm731_vm7, %v734_v11, %v728_v56  ;;  %v1093_v24 = vsel %vm1091_vm9, %v1092_v12, %v1087_v46  ;;  %v2005_v46 = vxor.u32 2147483648, %v378_v32  ;;  %v383_v55 = vsub.s32 %v378_v32, %v2386_v10 }
 0x168   :  { %v1719_v33 = vor.u32 %v1718_v27, %v1717_v26  ;;  %v1726_v31 = vadd.s32 1, %v1720_v28  ;;  %v1452_v26 = vsub.s32 %v1447_v61, %v2386_v10  ;;  %vm1451_vm10 = vcmp.ge.s32.totalorder %v2195_v17, %v2398_v15 }
 0x169   :  { %v736_v34 = vshrl.u32 %v2878_v22, 31  ;;  %v1097_v37 = vshll.u32 %v1093_v24, 1  ;;  %v739_v56 = vshll.u32 %v2878_v22, 1  ;;  %vm382_vm13 = vcmp.ge.s32.totalorder %v2005_v46, %v2398_v15 }
 0x16a   :  { %v2243_v1 = vxor.u32 2147483648, %v1719_v33  ;;  %v1724_v40 = vsub.s32 %v1719_v33, %v2386_v10  ;;  %v385_v57 = vadd.s32 1, %v379_v44  ;;  %v384_v5 = vsel %vm382_vm13, %v383_v55, %v378_v32 }
 0x16b   :  { %v745_v12 = vadd.s32 1, %v739_v56 }
 0x16c   :  { %vm1723_vm5 = vcmp.ge.s32.totalorder %v2243_v1, %v2398_v15  ;;  %v2899_v13 = vsel %vm382_vm13, %v385_v57, %v379_v44 }
 0x16d   :  { %v1725_v39 = vsel %vm1723_vm5, %v1724_v40, %v1719_v33  ;;  %v1727_v49 = vsel %vm1723_vm5, %v1726_v31, %v1720_v28  ;;  %v1454_v28 = vadd.s32 1, %v1448_v14  ;;  %v737_v33 = vshll.u32 %v733_v21, 1 }
 0x16e   :  { %v1728_v52 = vshrl.u32 %v1727_v49, 31  ;;  %v1729_v53 = vshll.u32 %v1725_v39, 1  ;;  %v1731_v6 = vshll.u32 %v1727_v49, 1  ;;  %v1453_v31 = vsel %vm1451_vm10, %v1452_v26, %v1447_v61 }
 0x16f   :  { %v2888_v40 = vsel %vm1451_vm10, %v1454_v28, %v1448_v14  ;;  %v738_v47 = vor.u32 %v737_v33, %v736_v34  ;;  %v1457_v51 = vshll.u32 %v1453_v31, 1  ;;  %v387_v20 = vshrl.u32 %v2899_v13, 31 }
 0x170   :  { %v1730_v50 = vor.u32 %v1729_v53, %v1728_v52  ;;  %v1737_v48 = vadd.s32 1, %v1731_v6  ;;  %v1456_v49 = vshrl.u32 %v2888_v40, 31  ;;  %v1098_v53 = vor.u32 %v1097_v37, %v1096_v35 }
 0x171   :  { %v2069_v59 = vxor.u32 2147483648, %v738_v47  ;;  %v743_v11 = vsub.s32 %v738_v47, %v2386_v10  ;;  %v1459_v14 = vshll.u32 %v2888_v40, 1  ;;  %v388_v21 = vshll.u32 %v384_v5, 1 }
 0x172   :  { %v2245_v62 = vxor.u32 2147483648, %v1730_v50  ;;  %v1735_v63 = vsub.s32 %v1730_v50, %v2386_v10  ;;  %v1458_v60 = vor.u32 %v1457_v51, %v1456_v49  ;;  %v390_v46 = vshll.u32 %v2899_v13, 1 }
 0x173   :  { %vm742_vm0 = vcmp.ge.s32.totalorder %v2069_v59, %v2398_v15  ;;  %v389_v33 = vor.u32 %v388_v21, %v387_v20 }
 0x174   :  { %vm1734_vm8 = vcmp.ge.s32.totalorder %v2245_v62, %v2398_v15  ;;  %v2133_v62 = vxor.u32 2147483648, %v1098_v53  ;;  %v2197_v17 = vxor.u32 2147483648, %v1458_v60  ;;  %v744_v22 = vsel %vm742_vm0, %v743_v11, %v738_v47 }
 0x175   :  { %v1736_v4 = vsel %vm1734_vm8, %v1735_v63, %v1730_v50  ;;  %v1738_v16 = vsel %vm1734_vm8, %v1737_v48, %v1731_v6  ;;  %v1099_v50 = vshll.u32 %v2880_v25, 1  ;;  %v1463_v24 = vsub.s32 %v1458_v60, %v2386_v10 }
 0x176   :  { %v1739_v36 = vshrl.u32 %v1738_v16, 31  ;;  %v1740_v58 = vshll.u32 %v1736_v4, 1  ;;  %v1742_v18 = vshll.u32 %v1738_v16, 1  ;;  %v1103_v16 = vsub.s32 %v1098_v53, %v2386_v10 }
 0x177   :  { %vm1102_vm4 = vcmp.ge.s32.totalorder %v2133_v62, %v2398_v15  ;;  %v1465_v25 = vadd.s32 1, %v1459_v14  ;;  %vm1462_vm6 = vcmp.ge.s32.totalorder %v2197_v17, %v2398_v15  ;;  %v748_v37 = vshll.u32 %v744_v22, 1 }
 0x178   :  { %v1741_v23 = vor.u32 %v1740_v58, %v1739_v36  ;;  %v1748_v27 = vadd.s32 1, %v1742_v18  ;;  %v1105_v58 = vadd.s32 1, %v1099_v50  ;;  %v1104_v26 = vsel %vm1102_vm4, %v1103_v16, %v1098_v53 }
 0x179   :  { %v1464_v31 = vsel %vm1462_vm6, %v1463_v24, %v1458_v60  ;;  %v2007_v49 = vxor.u32 2147483648, %v389_v33  ;;  %v394_v57 = vsub.s32 %v389_v33, %v2386_v10  ;;  %v396_v59 = vadd.s32 1, %v390_v46 }
 0x17a   :  { %v2247_v29 = vxor.u32 2147483648, %v1741_v23  ;;  %v1746_v30 = vsub.s32 %v1741_v23, %v2386_v10 }
 0x17b   :  { %vm393_vm8 = vcmp.ge.s32.totalorder %v2007_v49, %v2398_v15 }
 0x17c   :  { %vm1745_vm12 = vcmp.ge.s32.totalorder %v2247_v29, %v2398_v15  ;;  %v2912_v29 = vsel %vm1102_vm4, %v1105_v58, %v1099_v50  ;;  %v2925_v16 = vsel %vm393_vm8, %v396_v59, %v390_v46 }
 0x17d   :  { %v1747_v38 = vsel %vm1745_vm12, %v1746_v30, %v1741_v23  ;;  %v1749_v1 = vsel %vm1745_vm12, %v1748_v27, %v1742_v18  ;;  %v2907_v23 = vsel %vm742_vm0, %v745_v12, %v739_v56  ;;  %v1107_v40 = vshrl.u32 %v2912_v29, 31 }
 0x17e   :  { %v1750_v42 = vshrl.u32 %v1749_v1, 31  ;;  %v1751_v43 = vshll.u32 %v1747_v38, 1  ;;  %v1753_v45 = vshll.u32 %v1749_v1, 1  ;;  %v747_v35 = vshrl.u32 %v2907_v23, 31 }
 0x17f   :  { %v1466_v38 = vsel %vm1462_vm6, %v1465_v25, %v1459_v14  ;;  %v750_v50 = vshll.u32 %v2907_v23, 1  ;;  %v395_v12 = vsel %vm393_vm8, %v394_v57, %v389_v33  ;;  %v398_v25 = vshrl.u32 %v2925_v16, 31 }
 0x180   :  { %v1752_v39 = vor.u32 %v1751_v43, %v1750_v42  ;;  %v1759_v52 = vadd.s32 1, %v1753_v45  ;;  %v1108_v42 = vshll.u32 %v1104_v26, 1  ;;  %v1467_v47 = vshrl.u32 %v1466_v38, 31 }
 0x181   :  { %v749_v51 = vor.u32 %v748_v37, %v747_v35  ;;  %v756_v14 = vadd.s32 1, %v750_v50  ;;  %v399_v26 = vshll.u32 %v395_v12, 1 }
 0x182   :  { %v2249_v6 = vxor.u32 2147483648, %v1752_v39  ;;  %v1757_v54 = vsub.s32 %v1752_v39, %v2386_v10 }
 0x183   :  { %v754_v13 = vsub.s32 %v749_v51, %v2386_v10 }
 0x184   :  { %vm1756_vm14 = vcmp.ge.s32.totalorder %v2249_v6, %v2398_v15 }
 0x185   :  { %v1758_v48 = vsel %vm1756_vm14, %v1757_v54, %v1752_v39  ;;  %v1760_v61 = vsel %vm1756_vm14, %v1759_v52, %v1753_v45  ;;  %v1468_v39 = vshll.u32 %v1464_v31, 1  ;;  %v1109_v52 = vor.u32 %v1108_v42, %v1107_v40 }
 0x186   :  { %v1761_v63 = vshrl.u32 %v1760_v61, 31  ;;  %v1762_v2 = vshll.u32 %v1758_v48, 1  ;;  %v1764_v3 = vshll.u32 %v1760_v61, 1  ;;  %v2071_v48 = vxor.u32 2147483648, %v749_v51 }
 0x187   :  { %v1469_v60 = vor.u32 %v1468_v39, %v1467_v47  ;;  %v1110_v61 = vshll.u32 %v2912_v29, 1 }
 0x188   :  { %v1763_v4 = vor.u32 %v1762_v2, %v1761_v63  ;;  %v1770_v36 = vadd.s32 1, %v1764_v3  ;;  %v2135_v63 = vxor.u32 2147483648, %v1109_v52  ;;  %vm2928_vm9 = vcmp.ge.s32.totalorder %v2071_v48, %v2398_v15 }
 0x189   :  { %v755_v29 = vsel %vm2928_vm9, %v754_v13, %v749_v51 }
 0x18a   :  { %v2251_v18 = vxor.u32 2147483648, %v1763_v4  ;;  %v1768_v19 = vsub.s32 %v1763_v4, %v2386_v10  ;;  %vm2934_vm12 = vcmp.ge.s32.totalorder %v2135_v63, %v2398_v15  ;;  %v759_v42 = vshll.u32 %v755_v29, 1 }
 0x18c   :  { %vm1767_vm5 = vcmp.ge.s32.totalorder %v2251_v18, %v2398_v15  ;;  %v1114_v18 = vsub.s32 %v1109_v52, %v2386_v10 }
 0x18d   :  { %v1769_v27 = vsel %vm1767_vm5, %v1768_v19, %v1763_v4  ;;  %v1771_v28 = vsel %vm1767_vm5, %v1770_v36, %v1764_v3  ;;  %v1470_v3 = vshll.u32 %v1466_v38, 1  ;;  %v2199_v4 = vxor.u32 2147483648, %v1469_v60 }
 0x18e   :  { %v1772_v30 = vshrl.u32 %v1771_v28, 31  ;;  %v1773_v32 = vshll.u32 %v1769_v27, 1  ;;  %v1775_v34 = vshll.u32 %v1771_v28, 1  ;;  %v1116_v36 = vadd.s32 1, %v1110_v61 }
 0x18f   :  { %v1476_v21 = vadd.s32 1, %v1470_v3  ;;  %vm1473_vm13 = vcmp.ge.s32.totalorder %v2199_v4, %v2398_v15  ;;  %v1474_v27 = vsub.s32 %v1469_v60, %v2386_v10  ;;  %v1115_v33 = vsel %vm2934_vm12, %v1114_v18, %v1109_v52 }
 0x190   :  { %v1774_v1 = vor.u32 %v1773_v32, %v1772_v30  ;;  %v1781_v43 = vadd.s32 1, %v1775_v34  ;;  %v2946_v30 = vsel %vm2928_vm9, %v756_v14, %v750_v50  ;;  %v2950_v32 = vsel %vm2934_vm12, %v1116_v36, %v1110_v61 }
 0x191   :  { %v2954_v35 = vsel %vm1473_vm13, %v1476_v21, %v1470_v3  ;;  %v400_v38 = vor.u32 %v399_v26, %v398_v25  ;;  %v758_v40 = vshrl.u32 %v2946_v30, 31 }
 0x192   :  { %v2253_v45 = vxor.u32 2147483648, %v1774_v1  ;;  %v1779_v44 = vsub.s32 %v1774_v1, %v2386_v10 }
 0x193   :  { %v405_v48 = vsub.s32 %v400_v38, %v2386_v10 }
 0x194   :  { %vm1778_vm7 = vcmp.ge.s32.totalorder %v2253_v45, %v2398_v15  ;;  %v1119_v45 = vshll.u32 %v1115_v33, 1 }
 0x195   :  { %v1780_v53 = vsel %vm1778_vm7, %v1779_v44, %v1774_v1  ;;  %v1782_v6 = vsel %vm1778_vm7, %v1781_v43, %v1775_v34  ;;  %v1475_v1 = vsel %vm1473_vm13, %v1474_v27, %v1469_v60  ;;  %v1118_v43 = vshrl.u32 %v2950_v32, 31 }
 0x196   :  { %v1783_v54 = vshrl.u32 %v1782_v6, 31  ;;  %v1784_v55 = vshll.u32 %v1780_v53, 1  ;;  %v1786_v56 = vshll.u32 %v1782_v6, 1  ;;  %v1478_v44 = vshrl.u32 %v2954_v35, 31 }
 0x197   :  { %v1479_v39 = vshll.u32 %v1475_v1, 1  ;;  %v401_v53 = vshll.u32 %v2925_v16, 1  ;;  %v2009_v6 = vxor.u32 2147483648, %v400_v38 }
 0x198   :  { %v1785_v62 = vor.u32 %v1784_v55, %v1783_v54  ;;  %v1792_v2 = vadd.s32 1, %v1786_v56  ;;  %v760_v54 = vor.u32 %v759_v42, %v758_v40 }
 0x199   :  { %v1480_v59 = vor.u32 %v1479_v39, %v1478_v44  ;;  %v407_v61 = vadd.s32 1, %v401_v53  ;;  %vm404_vm0 = vcmp.ge.s32.totalorder %v2009_v6, %v2398_v15 }
 0x19a   :  { %v2255_v5 = vxor.u32 2147483648, %v1785_v62  ;;  %v1790_v11 = vsub.s32 %v1785_v62, %v2386_v10  ;;  %v2073_v63 = vxor.u32 2147483648, %v760_v54  ;;  %v406_v17 = vsel %vm404_vm0, %v405_v48, %v400_v38 }
 0x19b   :  { %v2201_v13 = vxor.u32 2147483648, %v1480_v59  ;;  %v765_v36 = vsub.s32 %v760_v54, %v2386_v10  ;;  %v408_v18 = vsel %vm404_vm0, %v407_v61, %v401_v53 }
 0x19c   :  { %vm1789_vm10 = vcmp.ge.s32.totalorder %v2255_v5, %v2398_v15  ;;  %v1481_v5 = vshll.u32 %v2954_v35, 1  ;;  %vm764_vm5 = vcmp.ge.s32.totalorder %v2073_v63, %v2398_v15  ;;  %v409_v27 = vshrl.u32 %v408_v18, 31 }
 0x19d   :  { %v1791_v19 = vsel %vm1789_vm10, %v1790_v11, %v1785_v62  ;;  %v1793_v20 = vsel %vm1789_vm10, %v1792_v2, %v1786_v56  ;;  %v1120_v56 = vor.u32 %v1119_v45, %v1118_v43  ;;  %v761_v62 = vshll.u32 %v2946_v30, 1 }
 0x19e   :  { %v1794_v22 = vshrl.u32 %v1793_v20, 31  ;;  %v1795_v23 = vshll.u32 %v1791_v19, 1  ;;  %v1797_v24 = vshll.u32 %v1793_v20, 1  ;;  %v1121_v2 = vshll.u32 %v2950_v32, 1 }
 0x19f   :  { %v2137_v3 = vxor.u32 2147483648, %v1120_v56  ;;  %v767_v58 = vadd.s32 1, %v761_v62  ;;  %v1125_v19 = vsub.s32 %v1120_v56, %v2386_v10  ;;  %vm1484_vm7 = vcmp.ge.s32.totalorder %v2201_v13, %v2398_v15 }
 0x1a0   :  { %v1796_v28 = vor.u32 %v1795_v23, %v1794_v22  ;;  %v1803_v34 = vadd.s32 1, %v1797_v24  ;;  %v1127_v21 = vadd.s32 1, %v1121_v2  ;;  %v1485_v22 = vsub.s32 %v1480_v59, %v2386_v10 }
 0x1a1   :  { %vm1124_vm6 = vcmp.ge.s32.totalorder %v2137_v3, %v2398_v15  ;;  %v766_v29 = vsel %vm764_vm5, %v765_v36, %v760_v54  ;;  %v768_v30 = vsel %vm764_vm5, %v767_v58, %v761_v62 }
 0x1a2   :  { %v2257_v37 = vxor.u32 2147483648, %v1796_v28  ;;  %v1801_v31 = vsub.s32 %v1796_v28, %v2386_v10  ;;  %v1126_v32 = vsel %vm1124_vm6, %v1125_v19, %v1120_v56  ;;  %v1486_v33 = vsel %vm1484_vm7, %v1485_v22, %v1480_v59 }
 0x1a3   :  { %v769_v42 = vshrl.u32 %v768_v30, 31  ;;  %v770_v43 = vshll.u32 %v766_v29, 1  ;;  %v1130_v44 = vshll.u32 %v1126_v32, 1  ;;  %v1490_v39 = vshll.u32 %v1486_v33, 1 }
 0x1a4   :  { %vm1800_vm14 = vcmp.ge.s32.totalorder %v2257_v37, %v2398_v15  ;;  %v1862_v30 = vstv %s1946_s21 }
 0x1a5   :  { %v1802_v46 = vsel %vm1800_vm14, %v1801_v31, %v1796_v28  ;;  %v1804_v47 = vsel %vm1800_vm14, %v1803_v34, %v1797_v24  ;;  %v1487_v24 = vadd.s32 1, %v1481_v5  ;;  %v410_v28 = vshll.u32 %v406_v17, 1 }
 0x1a6   :  { %v1805_v49 = vshrl.u32 %v1804_v47, 31  ;;  %v1806_v51 = vshll.u32 %v1802_v46, 1  ;;  %v1808_v52 = vshll.u32 %v1804_v47, 1  ;;  %v1128_v34 = vsel %vm1124_vm6, %v1127_v21, %v1121_v2 }
 0x1a7   :  { %v1488_v31 = vsel %vm1484_vm7, %v1487_v24, %v1481_v5  ;;  %v1129_v45 = vshrl.u32 %v1128_v34, 31  ;;  %v771_v6 = vor.u32 %v770_v43, %v769_v42  ;;  %v1888_v42 = vld [vmem:[#allocation6 + $0x30] sm:$0xff] }
 0x1a8   :  { %v1807_v55 = vor.u32 %v1806_v51, %v1805_v49  ;;  %v1814_v57 = vadd.s32 1, %v1808_v52  ;;  %v1489_v47 = vshrl.u32 %v1488_v31, 31  ;;  %v411_v51 = vor.u32 %v410_v28, %v409_v27  ;;  %v1886_v31 = vld [vmem:[#allocation6 + $0x20] sm:$0xff] }
 0x1a9   :  { %v1131_v54 = vor.u32 %v1130_v44, %v1129_v45  ;;  %v2075_v61 = vxor.u32 2147483648, %v771_v6  ;;  %v1889_v44 = vld [vmem:[#allocation6 + $0x38] sm:$0xff] }
 0x1aa   :  { %v2259_v50 = vxor.u32 2147483648, %v1807_v55  ;;  %v1812_v60 = vsub.s32 %v1807_v55, %v2386_v10  ;;  %v2011_v59 = vxor.u32 2147483648, %v411_v51  ;;  %v416_v2 = vsub.s32 %v411_v51, %v2386_v10 }
 0x1ab   :  { %v2139_v62 = vxor.u32 2147483648, %v1131_v54  ;;  %vm775_vm12 = vcmp.ge.s32.totalorder %v2075_v61, %v2398_v15 }
 0x1ac   :  { %vm1811_vm4 = vcmp.ge.s32.totalorder %v2259_v50, %v2398_v15  ;;  %vm415_vm10 = vcmp.ge.s32.totalorder %v2011_v59, %v2398_v15 }
 0x1ad   :  { %v1813_v11 = vsel %vm1811_vm4, %v1812_v60, %v1807_v55  ;;  %v1815_v12 = vsel %vm1811_vm4, %v1814_v57, %v1808_v52  ;;  %v1491_v55 = vor.u32 %v1490_v39, %v1489_v47  ;;  %vm1135_vm13 = vcmp.ge.s32.totalorder %v2139_v62, %v2398_v15  ;;  %v1890_v39 = vld [vmem:[#allocation6 + $0x40] sm:$0xff] }
 0x1ae   :  { %v1816_v14 = vshrl.u32 %v1815_v12, 31  ;;  %v1817_v4 = vshll.u32 %v1813_v11, 1  ;;  %v1819_v16 = vshll.u32 %v1815_v12, 1  ;;  %v776_v11 = vsub.s32 %v771_v6, %v2386_v10 }
 0x1af   :  { %v2203_v3 = vxor.u32 2147483648, %v1491_v55 }
 0x1b0   :  { %v1818_v20 = vor.u32 %v1817_v4, %v1816_v14  ;;  %v1825_v23 = vadd.s32 1, %v1819_v16  ;;  %v1136_v14 = vsub.s32 %v1131_v54, %v2386_v10  ;;  %v1496_v4 = vsub.s32 %v1491_v55, %v2386_v10 }
 0x1b1   :  { %vm1495_vm0 = vcmp.ge.s32.totalorder %v2203_v3, %v2398_v15  ;;  %v777_v58 = vsel %vm775_vm12, %v776_v11, %v771_v6  ;;  %v1892_v6 = vld [vmem:[#allocation6 + $0x50] sm:$0xff] }
 0x1b2   :  { %v2261_v25 = vxor.u32 2147483648, %v1818_v20  ;;  %v1823_v26 = vsub.s32 %v1818_v20, %v2386_v10  ;;  %v1497_v22 = vsel %vm1495_vm0, %v1496_v4, %v1491_v55  ;;  %v780_v24 = vsub.s32 0, %v777_v58  ;;  %v1893_v55 = vld [vmem:[#allocation6 + $0x58] sm:$0xff] }
 0x1b3   :  { %v1500_v28 = vsub.s32 0, %v1497_v22 }
 0x1b4   :  { %vm1822_vm8 = vcmp.ge.s32.totalorder %v2261_v25, %v2398_v15  ;;  %v781_v32 = vsel %vm422_vm2, %v780_v24, %v777_v58 }
 0x1b5   :  { %v1824_v35 = vsel %vm1822_vm8, %v1823_v26, %v1818_v20  ;;  %v1826_v37 = vsel %vm1822_vm8, %v1825_v23, %v1819_v16  ;;  %v417_v16 = vsel %vm415_vm10, %v416_v2, %v411_v51  ;;  %v1137_v20 = vsel %vm1135_vm13, %v1136_v14, %v1131_v54 }
 0x1b6   :  { %v1827_v38 = vshrl.u32 %v1826_v37, 31  ;;  %v1828_v1 = vshll.u32 %v1824_v35, 1  ;;  %v1830_v40 = vshll.u32 %v1826_v37, 1  ;;  %v420_v21 = vsub.s32 0, %v417_v16 }
 0x1b7   :  { %v1140_v25 = vsub.s32 0, %v1137_v20  ;;  %v1501_v37 = vsel %vm1142_vm15, %v1500_v28, %v1497_v22  ;;  %vm1864_vm6 = vcmp.ge.s32.totalorder %v781_v32, %v1862_v30 }
 0x1b8   :  { %v1829_v46 = vor.u32 %v1828_v1, %v1827_v38  ;;  %v1836_v49 = vadd.s32 1, %v1830_v40  ;;  %v421_v29 = vsel %vm62_vm1, %v420_v21, %v417_v16  ;;  %vm1866_vm8 = vcmp.ge.s32.totalorder %v1501_v37, %v1862_v30  ;;  %v1887_v1 = vld [vmem:[#allocation6 + $0x28] sm:$0xff] }
 0x1b9   :  { %v1141_v33 = vsel %vm782_vm3, %v1140_v25, %v1137_v20  ;;  %vm1863_vm5 = vcmp.ge.s32.totalorder %v421_v29, %v1862_v30 }
 0x1ba   :  { %v2263_v52 = vxor.u32 2147483648, %v1829_v46  ;;  %v1834_v53 = vsub.s32 %v1829_v46, %v2386_v10  ;;  %vm1865_vm1 = vcmp.ge.s32.totalorder %v1141_v33, %v1862_v30 }
 0x1bc   :  { %vm1833_vm9 = vcmp.ge.s32.totalorder %v2263_v52, %v2398_v15  ;;  %v1891_v52 = vld [vmem:[#allocation6 + $0x48] sm:$0xff] }
 0x1bd   :  { %v1835_v56 = vsel %vm1833_vm9, %v1834_v53, %v1829_v46  ;;  %v1837_v57 = vsel %vm1833_vm9, %v1836_v49, %v1830_v40 }
 0x1be   :  { %v1838_v50 = vshrl.u32 %v1837_v57, 31  ;;  %v1839_v60 = vshll.u32 %v1835_v56, 1  ;;  %v1841_v48 = vshll.u32 %v1837_v57, 1 }
 0x1c0   :  { %v1840_v63 = vor.u32 %v1839_v60, %v1838_v50  ;;  %v1847_v5 = vadd.s32 1, %v1841_v48 }
 0x1c2   :  { %v2265_v12 = vxor.u32 2147483648, %v1840_v63  ;;  %v1845_v13 = vsub.s32 %v1840_v63, %v2386_v10 }
 0x1c4   :  { %vm1844_vm14 = vcmp.ge.s32.totalorder %v2265_v12, %v2398_v15 }
 0x1c5   :  { %v1846_v17 = vsel %vm1844_vm14, %v1845_v13, %v1840_v63  ;;  %v1848_v36 = vsel %vm1844_vm14, %v1847_v5, %v1841_v48 }
 0x1c6   :  { %v1849_v18 = vshrl.u32 %v1848_v36, 31  ;;  %v1850_v19 = vshll.u32 %v1846_v17, 1 }
 0x1c8   :  { %v1851_v23 = vor.u32 %v1850_v19, %v1849_v18 }
 0x1ca   :  { %v2267_v26 = vxor.u32 2147483648, %v1851_v23  ;;  %v1856_v27 = vsub.s32 %v1851_v23, %v2386_v10 }
 0x1cc   :  { %vm1855_vm4 = vcmp.ge.s32.totalorder %v2267_v26, %v2398_v15  ;;  %v1883_v15 = vld [vmem:[#allocation6 + $0x8] sm:$0xff] }
 0x1cd   :  { %v1857_v34 = vsel %vm1855_vm4, %v1856_v27, %v1851_v23 }
 0x1ce   :  { %v1860_v35 = vsub.s32 0, %v1857_v34 }
 0x1d0   :  { %v1861_v10 = vsel %vm1502_vm11, %v1860_v35, %v1857_v34 }
 0x1d1   :  { %vm1867_vm7 = vcmp.ge.s32.totalorder %v1861_v10, %v1862_v30 }
 0x1d2   :  { %vm3001_vm9 = vmand %vm1863_vm5, %vm1867_vm7 }
 0x1d3   :  { %vm3005_vm2 = vmand %vm1864_vm6, %vm1867_vm7  ;;  %v1902_v0 = vsel %vm3001_vm9, %v1882_v7, 0.0  ;;  %v1906_v47 = vsel %vm3001_vm9, %v1886_v31, 0.0  ;;  %v1910_v56 = vsel %vm3001_vm9, %v1890_v39, 0.0 }
 0x1d4   :  { %vm3011_vm3 = vmand %vm1865_vm1, %vm1867_vm7  ;;  %v1903_v43 = vsel %vm3005_vm2, %v1883_v15, 0.0  ;;  %1914 = vst [vmem:[#allocation7] sm:$0xff] %v1902_v0  ;;  %v1907_v51 = vsel %vm3005_vm2, %v1887_v1, 0.0  ;;  %v1911_v57 = vsel %vm3005_vm2, %v1891_v52, 0.0 }
 0x1d5   :  { %vm3017_vm15 = vmand %vm1866_vm8, %vm1867_vm7  ;;  %v1904_v46 = vsel %vm3011_vm3, %v1884_v9, 0.0  ;;  %1915 = vst [vmem:[#allocation7 + $0x8] sm:$0xff] %v1903_v43  ;;  %v1908_v53 = vsel %vm3011_vm3, %v1888_v42, 0.0  ;;  %v1912_v59 = vsel %vm3011_vm3, %v1892_v6, 0.0 }
 0x1d6   :  { %v1905_v49 = vsel %vm3017_vm15, %v1885_v41, 0.0  ;;  %1916 = vst [vmem:[#allocation7 + $0x10] sm:$0xff] %v1904_v46  ;;  %v1909_v54 = vsel %vm3017_vm15, %v1889_v44, 0.0  ;;  %v1913_v50 = vsel %vm3017_vm15, %v1893_v55, 0.0 }
 0x1d7   :  { %1917 = vst [vmem:[#allocation7 + $0x18] sm:$0xff] %v1905_v49 }
 0x1d8   :  { %1918 = vst [vmem:[#allocation7 + $0x20] sm:$0xff] %v1906_v47 }
 0x1d9   :  { %1919 = vst [vmem:[#allocation7 + $0x28] sm:$0xff] %v1907_v51 }
 0x1da   :  { %1920 = vst [vmem:[#allocation7 + $0x30] sm:$0xff] %v1908_v53 }
 0x1db   :  { %1921 = vst [vmem:[#allocation7 + $0x38] sm:$0xff] %v1909_v54 }
 0x1dc   :  { %1922 = vst [vmem:[#allocation7 + $0x40] sm:$0xff] %v1910_v56 }
 0x1dd   :  { %1923 = vst [vmem:[#allocation7 + $0x48] sm:$0xff] %v1911_v57 }
 0x1de   :  { %1924 = vst [vmem:[#allocation7 + $0x50] sm:$0xff] %v1912_v59 }
 0x1df   :  { %1925 = vst [vmem:[#allocation7 + $0x58] sm:$0xff] %v1913_v50 }
 0x1e0   :  { %1938 = dma.vmem_to_hbm [thread:$0]  %s1931_s23, 1536, %s1933_s26, [#allocation4], %s2342_s18, %s2342_s18, %s2343_s19  }
 0x1e1   :  { %2338 = dma.done.wait [#allocation4], 1536  }
 0x1e2   :  { %2339 = vsyncadd [#allocation4], 4294965760 }
 0x1e3   :  { %1943 = vsyncpa [#allocation3], 1 }
 0x1e4   :  { %1944 = vsyncpa [#allocation4], 1 }
 0x1e5   :  { %1945 = vsyncpa [#allocation5], 1 }

</bundles_post_ra>
